<compile_context>
chip_gen: v7x
topology: tpu7x:2x2x1
jax: 0.10.0
libtpu: 0.0.40
codegen_flags: <defaults>
</compile_context>

<pallas_src>
import math
import functools

import jax
import jax.numpy as jnp
from jax import lax
from jax.experimental import pallas as pl
from jax.experimental.pallas import tpu as pltpu
import numpy as np

BN_EPS = 1e-5
NORM_EPS = 1e-12  # torch.nn.functional.normalize clamp


def _auto_block(d):
    """Lane-aligned column tile: 256 matches v6e/v7x 256-wide MXU; keep >=2 grid steps
    when possible so v7x megacore can shard the feature axis; fall back to full D."""
    if d % 256 == 0 and d // 256 >= 2:
        return 256
    if d % 128 == 0 and d // 128 >= 2:
        return 128
    return d


def _vmem_limit(n, d, bd):
    # full x (fetched once, double-buffered), W/out column blocks double-buffered,
    # parameter rows; generous margin for internal scratch.
    est = 4 * (2 * n * d + 2 * d * bd + 2 * n * bd + 4 * d)
    return min(int(2 * est) + (16 << 20), 96 << 20)


# ---------------------------------------------------------------------------
# Kernel 1: soft assignment  softmax(BN(x @ cluster_weights))
# ---------------------------------------------------------------------------
def _assign_kernel(x_ref, w_ref, gamma_ref, beta_ref, out_ref):
    gates = jnp.dot(x_ref[...], w_ref[...], preferred_element_type=jnp.float32)  # (N, K)
    mean = jnp.mean(gates, axis=0, keepdims=True)
    var = jnp.maximum(jnp.mean(gates * gates, axis=0, keepdims=True) - mean * mean, 0.0)
    scale = gamma_ref[...] * lax.rsqrt(var + BN_EPS)
    g = (gates - mean) * scale + beta_ref[...]
    m = jnp.max(g, axis=-1, keepdims=True)
    e = jnp.exp(g - m)
    out_ref[...] = (e / jnp.sum(e, axis=-1, keepdims=True)).astype(out_ref.dtype)


def soft_assign_bn(x2d, cluster_w, gamma, beta):
    n, f = x2d.shape
    k = cluster_w.shape[1]
    return pl.pallas_call(
        _assign_kernel,
        out_shape=jax.ShapeDtypeStruct((n, k), x2d.dtype),
        grid_spec=pltpu.PrefetchScalarGridSpec(
            num_scalar_prefetch=0,
            grid=(1,),
            in_specs=[
                pl.BlockSpec((n, f), lambda i: (0, 0)),
                pl.BlockSpec((f, k), lambda i: (0, 0)),
                pl.BlockSpec((1, k), lambda i: (0, 0)),
                pl.BlockSpec((1, k), lambda i: (0, 0)),
            ],
            out_specs=pl.BlockSpec((n, k), lambda i: (0, 0)),
        ),
        compiler_params=pltpu.CompilerParams(dimension_semantics=("arbitrary",)),
    )(x2d, cluster_w, gamma.reshape(1, k), beta.reshape(1, k))


# ---------------------------------------------------------------------------
# Kernel 2: per-batch VLAD aggregation + intra-norm + global norm
#   inputs: act (B, M, K), x_t (B, F, M)  (x pre-transposed in the wrapper so the
#   in-kernel matmul is a plain (F,M) @ (M,K)), cw2 (F, K)
# ---------------------------------------------------------------------------
def _vlad_kernel(act_ref, xt_ref, cw2_ref, out_ref):
    act = act_ref[0]                                    # (M, K)
    x_t = xt_ref[0]                                     # (F, M)
    a_sum = jnp.sum(act, axis=0, keepdims=True)         # (1, K)
    vlad = jnp.dot(x_t, act, preferred_element_type=jnp.float32)   # (F, K)
    vlad = vlad - a_sum * cw2_ref[...]
    # intra-normalization over the feature axis (torch: F.normalize(vlad, dim=1))
    col = jnp.sqrt(jnp.sum(vlad * vlad, axis=0, keepdims=True))    # (1, K)
    vlad = vlad / jnp.maximum(col, NORM_EPS)
    # flatten-normalization == Frobenius norm of the (F, K) block
    row = jnp.sum(vlad * vlad, axis=1, keepdims=True)              # (F, 1)
    fro = jnp.sqrt(jnp.sum(row, axis=0, keepdims=True))            # (1, 1)
    vlad = vlad / jnp.maximum(fro, NORM_EPS)
    out_ref[0] = vlad.astype(out_ref.dtype)


def vlad_aggregate(act3, x_t3, cw2):
    b, m, k = act3.shape
    f = x_t3.shape[1]
    return pl.pallas_call(
        _vlad_kernel,
        out_shape=jax.ShapeDtypeStruct((b, f, k), act3.dtype),
        grid_spec=pltpu.PrefetchScalarGridSpec(
            num_scalar_prefetch=0,
            grid=(b,),
            in_specs=[
                pl.BlockSpec((1, m, k), lambda i: (i, 0, 0)),
                pl.BlockSpec((1, f, m), lambda i: (i, 0, 0)),
                pl.BlockSpec((f, k), lambda i: (0, 0)),
            ],
            out_specs=pl.BlockSpec((1, f, k), lambda i: (i, 0, 0)),
        ),
        compiler_params=pltpu.CompilerParams(dimension_semantics=("parallel",)),
    )(act3, x_t3, cw2)


# ---------------------------------------------------------------------------
# Kernel 3: hidden projection (column-tiled matmul)
# ---------------------------------------------------------------------------
def _matmul_cols_kernel(x_ref, w_ref, out_ref):
    out_ref[...] = jnp.dot(x_ref[...], w_ref[...],
                           preferred_element_type=jnp.float32).astype(out_ref.dtype)


def matmul_cols(x, w, block_n=None):
    n, kdim = x.shape
    dout = w.shape[1]
    bn = block_n if block_n is not None else _auto_block(dout)
    assert dout % bn == 0
    return pl.pallas_call(
        _matmul_cols_kernel,
        out_shape=jax.ShapeDtypeStruct((n, dout), x.dtype),
        grid_spec=pltpu.PrefetchScalarGridSpec(
            num_scalar_prefetch=0,
            grid=(dout // bn,),
            in_specs=[
                pl.BlockSpec((n, kdim), lambda j: (0, 0)),    # full LHS, fetched once
                pl.BlockSpec((kdim, bn), lambda j: (0, j)),
            ],
            out_specs=pl.BlockSpec((n, bn), lambda j: (0, j)),
        ),
        compiler_params=pltpu.CompilerParams(
            dimension_semantics=("parallel",),
            vmem_limit_bytes=_vmem_limit(n, kdim, bn)),
    )(x, w)


# ---------------------------------------------------------------------------
# Kernel 4: GatingContext (improved per perf review)
# ---------------------------------------------------------------------------
def _gating_bn_kernel(x_ref, w_ref, gamma_ref, beta_ref, out_ref, *, block_d):
    j = pl.program_id(0)
    start = pl.multiple_of(j * block_d, block_d)
    # Native-dtype matmul; MXU accumulates in f32 via preferred_element_type.
    gates = jnp.dot(x_ref[...], w_ref[...], preferred_element_type=jnp.float32)  # (N, TD)
    # Training-mode BatchNorm1d, single-pass biased statistics.
    mean = jnp.mean(gates, axis=0, keepdims=True)
    var = jnp.maximum(jnp.mean(gates * gates, axis=0, keepdims=True) - mean * mean, 0.0)
    scale = gamma_ref[:, pl.ds(start, block_d)] * lax.rsqrt(var + BN_EPS)
    g = jax.nn.sigmoid((gates - mean) * scale + beta_ref[:, pl.ds(start, block_d)])
    # Elementwise factor: slice the already-resident full-x block (no duplicate x input).
    xb = x_ref[:, pl.ds(start, block_d)]
    out_ref[...] = (xb * g).astype(out_ref.dtype)


def gating_context_bn(x, w, gamma, beta, block_d=None):
    n, d = x.shape
    bd = block_d if block_d is not None else _auto_block(d)
    assert d % bd == 0
    kernel = functools.partial(_gating_bn_kernel, block_d=bd)
    return pl.pallas_call(
        kernel,
        out_shape=jax.ShapeDtypeStruct((n, d), x.dtype),
        grid_spec=pltpu.PrefetchScalarGridSpec(
            num_scalar_prefetch=0,
            grid=(d // bd,),
            in_specs=[
                pl.BlockSpec((n, d), lambda j: (0, 0)),     # full x (matmul LHS + factor)
                pl.BlockSpec((d, bd), lambda j: (0, j)),    # W column block
                pl.BlockSpec((1, d), lambda j: (0, 0)),     # gamma, full row, fetched once
                pl.BlockSpec((1, d), lambda j: (0, 0)),     # beta
            ],
            out_specs=pl.BlockSpec((n, bd), lambda j: (0, j)),
        ),
        compiler_params=pltpu.CompilerParams(
            dimension_semantics=("parallel",),
            vmem_limit_bytes=_vmem_limit(n, d, bd)),
    )(x, w, gamma.reshape(1, d), beta.reshape(1, d))


def _gating_bias_kernel(x_ref, w_ref, bias_ref, out_ref, *, block_d):
    j = pl.program_id(0)
    start = pl.multiple_of(j * block_d, block_d)
    gates = jnp.dot(x_ref[...], w_ref[...], preferred_element_type=jnp.float32)
    g = jax.nn.sigmoid(gates + bias_ref[:, pl.ds(start, block_d)])
    xb = x_ref[:, pl.ds(start, block_d)]
    out_ref[...] = (xb * g).astype(out_ref.dtype)


def gating_context_bias(x, w, bias, block_d=None):
    n, d = x.shape
    bd = block_d if block_d is not None else _auto_block(d)
    assert d % bd == 0
    kernel = functools.partial(_gating_bias_kernel, block_d=bd)
    return pl.pallas_call(
        kernel,
        out_shape=jax.ShapeDtypeStruct((n, d), x.dtype),
        grid_spec=pltpu.PrefetchScalarGridSpec(
            num_scalar_prefetch=0,
            grid=(d // bd,),
            in_specs=[
                pl.BlockSpec((n, d), lambda j: (0, 0)),
                pl.BlockSpec((d, bd), lambda j: (0, j)),
                pl.BlockSpec((1, d), lambda j: (0, 0)),
            ],
            out_specs=pl.BlockSpec((n, bd), lambda j: (0, j)),
        ),
        compiler_params=pltpu.CompilerParams(
            dimension_semantics=("parallel",),
            vmem_limit_bytes=_vmem_limit(n, d, bd)),
    )(x, w, bias.reshape(1, d))


# ---------------------------------------------------------------------------
# Full NetVLADLoupe forward (gating=True, add_batch_norm=True)
# ---------------------------------------------------------------------------
@jax.jit
def netvlad_loupe_forward(x4d, params):
    b, c, h, w = x4d.shape
    f, m = c, h * w
    k = params["cluster_weights"].shape[1]
    # x.transpose(1, 3).contiguous().view(-1, max_samples, feature_size)
    x3 = jnp.transpose(x4d, (0, 3, 2, 1)).reshape(b, m, f)
    x2 = x3.reshape(b * m, f)
    act = soft_assign_bn(x2, params["cluster_weights"],
                         params["bn1_gamma"], params["bn1_beta"])          # (B*M, K)
    act3 = act.reshape(b, m, k)
    x_t3 = jnp.transpose(x3, (0, 2, 1))                                    # (B, F, M)
    cw2 = params["cluster_weights2"].reshape(f, k)
    vlad = vlad_aggregate(act3, x_t3, cw2)                                 # (B, F, K)
    vlad_flat = vlad.reshape(b, f * k)                                     # f-major, as torch reshape
    hidden = matmul_cols(vlad_flat, params["hidden1_weights"])             # (B, Dout)
    return gating_context_bn(hidden, params["gating_weights"],
                             params["gate_bn_gamma"], params["gate_bn_beta"])


# ---------------------------------------------------------------------------
# Pure-JAX reference mirroring PyTorch semantics (training-mode BN)
# ---------------------------------------------------------------------------
def _bn_train_ref(x2d, gamma, beta):
    mean = jnp.mean(x2d, axis=0, keepdims=True)
    var = jnp.mean((x2d - mean) ** 2, axis=0, keepdims=True)   # biased, as used for normalization
    return (x2d - mean) / jnp.sqrt(var + BN_EPS) * gamma.reshape(1, -1) + beta.reshape(1, -1)


def netvlad_loupe_ref(x4d, p):
    b, c, h, w = x4d.shape
    f, m = c, h * w
    k = p["cluster_weights"].shape[1]
    x = jnp.transpose(x4d, (0, 3, 2, 1)).reshape(b, m, f)
    activation = jnp.matmul(x, p["cluster_weights"])                            # (B,M,K)
    activation = _bn_train_ref(activation.reshape(-1, k),
                               p["bn1_gamma"], p["bn1_beta"]).reshape(b, m, k)
    activation = jax.nn.softmax(activation, axis=-1)
    a_sum = jnp.sum(activation, axis=-2, keepdims=True)                         # (B,1,K)
    a = a_sum * p["cluster_weights2"]                                           # (B,F,K)
    vlad = jnp.matmul(jnp.transpose(activation, (0, 2, 1)), x)                  # (B,K,F)
    vlad = jnp.transpose(vlad, (0, 2, 1)) - a                                   # (B,F,K)
    vlad = vlad / jnp.maximum(jnp.sqrt(jnp.sum(vlad * vlad, axis=1, keepdims=True)), NORM_EPS)
    vlad = vlad.reshape(b, k * f)
    vlad = vlad / jnp.maximum(jnp.sqrt(jnp.sum(vlad * vlad, axis=1, keepdims=True)), NORM_EPS)
    vlad = jnp.matmul(vlad, p["hidden1_weights"])
    gates = jnp.matmul(vlad, p["gating_weights"])
    gates = _bn_train_ref(gates, p["gate_bn_gamma"], p["gate_bn_beta"])
    return vlad * jax.nn.sigmoid(gates)


def gating_bias_ref(x, w, bias):
    return x * jax.nn.sigmoid(x @ w + bias)


if __name__ == "__main__":
    key = jax.random.PRNGKey(0)
    B, FEAT, H, W_SP = 2, 64, 4, 4          # feature_size=64, max_samples=16
    K = 16                                  # cluster_size
    DOUT = 256                              # output_dim

    keys = jax.random.split(key, 10)
    x4d = jax.random.normal(keys[0], (B, FEAT, H, W_SP), dtype=jnp.float32)

    params = {
        "cluster_weights": jax.random.normal(keys[1], (FEAT, K), jnp.float32) / math.sqrt(FEAT),
        "cluster_weights2": jax.random.normal(keys[2], (1, FEAT, K), jnp.float32) / math.sqrt(FEAT),
        "hidden1_weights": jax.random.normal(keys[3], (K * FEAT, DOUT), jnp.float32) / math.sqrt(FEAT),
        "bn1_gamma": 1.0 + 0.1 * jax.random.normal(keys[4], (K,), jnp.float32),
        "bn1_beta": 0.1 * jax.random.normal(keys[5], (K,), jnp.float32),
        "gating_weights": jax.random.normal(keys[6], (DOUT, DOUT), jnp.float32) / math.sqrt(DOUT),
        "gate_bn_gamma": 1.0 + 0.1 * jax.random.normal(keys[7], (DOUT,), jnp.float32),
        "gate_bn_beta": 0.1 * jax.random.normal(keys[8], (DOUT,), jnp.float32),
    }

    out = jax.block_until_ready(netvlad_loupe_forward(x4d, params))
    ref = netvlad_loupe_ref(x4d, params)
    np.testing.assert_allclose(np.asarray(out), np.asarray(ref), rtol=1e-4, atol=1e-5)

    # Standalone check of the add_batch_norm=False gating path (module option).
    xg = jax.random.normal(keys[9], (8, DOUT), dtype=jnp.float32)
    bias = jax.random.normal(keys[4], (DOUT,), jnp.float32) / math.sqrt(DOUT)
    out_b = jax.block_until_ready(gating_context_bias(xg, params["gating_weights"], bias))
    np.testing.assert_allclose(np.asarray(out_b),
                               np.asarray(gating_bias_ref(xg, params["gating_weights"], bias)),
                               rtol=1e-4, atol=1e-5)

    print("KERNEL_OK")
</pallas_src>

<mosaic_0001>
module attributes {stable_mosaic.version = 11 : i64} {
  func.func @_assign_kernel(%arg0: i32, %arg1: memref<32x64xf32, #tpu.memory_space<vmem>>, %arg2: memref<64x16xf32, #tpu.memory_space<vmem>>, %arg3: memref<1x16xf32, #tpu.memory_space<vmem>>, %arg4: memref<1x16xf32, #tpu.memory_space<vmem>>, %arg5: memref<32x16xf32, #tpu.memory_space<vmem>>) attributes {dimension_semantics = [#tpu.dimension_semantics<arbitrary>], iteration_bounds = array<i64: 1>, scalar_prefetch = 0 : i64, scratch_operands = 0 : i64, tpu.core_type = #tpu.core_type<tc>, window_params = [{pipeline_mode = #tpu.pipeline_mode<synchronous>, transform_indices = @transform_0, window_bounds = array<i64: 32, 64>}, {pipeline_mode = #tpu.pipeline_mode<synchronous>, transform_indices = @transform_1, window_bounds = array<i64: 64, 16>}, {pipeline_mode = #tpu.pipeline_mode<synchronous>, transform_indices = @transform_2, window_bounds = array<i64: 1, 16>}, {pipeline_mode = #tpu.pipeline_mode<synchronous>, transform_indices = @transform_3, window_bounds = array<i64: 1, 16>}, {pipeline_mode = #tpu.pipeline_mode<synchronous>, transform_indices = @transform_4, window_bounds = array<i64: 32, 16>}]} {
    %c0 = arith.constant 0 : index
    %c0_0 = arith.constant 0 : index
    %0 = vector.load %arg1[%c0, %c0_0] : memref<32x64xf32, #tpu.memory_space<vmem>>, vector<32x64xf32>
    %c0_1 = arith.constant 0 : index
    %c0_2 = arith.constant 0 : index
    %1 = vector.load %arg2[%c0_1, %c0_2] : memref<64x16xf32, #tpu.memory_space<vmem>>, vector<64x16xf32>
    %cst = arith.constant dense<0.000000e+00> : vector<32x16xf32>
    %2 = tpu.matmul %0, %1, %cst {dimension_numbers = #tpu.dot_dimension_numbers<[1], [0], [0], [1], [0, 0, 1, 1], [], []>} : vector<32x64xf32>, vector<64x16xf32>, vector<32x16xf32> -> vector<32x16xf32>
    %cst_3 = arith.constant dense<0.000000e+00> : vector<16xf32>
    %3 = vector.multi_reduction <add>, %2, %cst_3 [0] : vector<32x16xf32> to vector<16xf32>
    %4 = vector.shape_cast %3 : vector<16xf32> to vector<1x16xf32>
    %cst_4 = arith.constant 3.200000e+01 : f32
    %5 = vector.broadcast %cst_4 : f32 to vector<1x16xf32>
    %6 = arith.divf %4, %5 : vector<1x16xf32>
    %7 = arith.mulf %2, %2 : vector<32x16xf32>
    %cst_5 = arith.constant dense<0.000000e+00> : vector<16xf32>
    %8 = vector.multi_reduction <add>, %7, %cst_5 [0] : vector<32x16xf32> to vector<16xf32>
    %9 = vector.shape_cast %8 : vector<16xf32> to vector<1x16xf32>
    %cst_6 = arith.constant 3.200000e+01 : f32
    %10 = vector.broadcast %cst_6 : f32 to vector<1x16xf32>
    %11 = arith.divf %9, %10 : vector<1x16xf32>
    %12 = arith.mulf %6, %6 : vector<1x16xf32>
    %13 = arith.subf %11, %12 : vector<1x16xf32>
    %cst_7 = arith.constant 0.000000e+00 : f32
    %14 = vector.broadcast %cst_7 : f32 to vector<1x16xf32>
    %15 = arith.maximumf %13, %14 : vector<1x16xf32>
    %c0_8 = arith.constant 0 : index
    %c0_9 = arith.constant 0 : index
    %16 = vector.load %arg3[%c0_8, %c0_9] : memref<1x16xf32, #tpu.memory_space<vmem>>, vector<1x16xf32>
    %cst_10 = arith.constant 9.99999974E-6 : f32
    %17 = vector.broadcast %cst_10 : f32 to vector<1x16xf32>
    %18 = arith.addf %15, %17 : vector<1x16xf32>
    %19 = math.rsqrt %18 : vector<1x16xf32>
    %20 = arith.mulf %16, %19 : vector<1x16xf32>
    %21 = vector.broadcast %6 : vector<1x16xf32> to vector<32x16xf32>
    %22 = arith.subf %2, %21 : vector<32x16xf32>
    %23 = vector.broadcast %20 : vector<1x16xf32> to vector<32x16xf32>
    %24 = arith.mulf %22, %23 : vector<32x16xf32>
    %c0_11 = arith.constant 0 : index
    %c0_12 = arith.constant 0 : index
    %25 = vector.load %arg4[%c0_11, %c0_12] : memref<1x16xf32, #tpu.memory_space<vmem>>, vector<1x16xf32>
    %26 = vector.broadcast %25 : vector<1x16xf32> to vector<32x16xf32>
    %27 = arith.addf %24, %26 : vector<32x16xf32>
    %cst_13 = arith.constant dense<0xFF800000> : vector<32xf32>
    %28 = vector.multi_reduction <maximumf>, %27, %cst_13 [1] : vector<32x16xf32> to vector<32xf32>
    %29 = vector.shape_cast %28 : vector<32xf32> to vector<32x1xf32>
    %30 = vector.broadcast %29 : vector<32x1xf32> to vector<32x16xf32>
    %31 = arith.subf %27, %30 : vector<32x16xf32>
    %32 = math.exp %31 : vector<32x16xf32>
    %cst_14 = arith.constant dense<0.000000e+00> : vector<32xf32>
    %33 = vector.multi_reduction <add>, %32, %cst_14 [1] : vector<32x16xf32> to vector<32xf32>
    %34 = vector.shape_cast %33 : vector<32xf32> to vector<32x1xf32>
    %35 = vector.broadcast %34 : vector<32x1xf32> to vector<32x16xf32>
    %36 = arith.divf %32, %35 : vector<32x16xf32>
    %c0_15 = arith.constant 0 : index
    %c0_16 = arith.constant 0 : index
    %37 = vector.load %arg5[%c0_15, %c0_16] : memref<32x16xf32, #tpu.memory_space<vmem>>, vector<32x16xf32>
    tpu.vector_store %arg5[%c0_15, %c0_16], %36 {strides = array<i32>} : memref<32x16xf32, #tpu.memory_space<vmem>>, vector<32x16xf32>,
    return
  }
  func.func @transform_0(%arg0: i32) -> (i32, i32) {
    %c0_i32 = arith.constant 0 : i32
    %c0_i32_0 = arith.constant 0 : i32
    %c0_i32_1 = arith.constant 0 : i32
    return %c0_i32, %c0_i32_0 : i32, i32
  }
  func.func @transform_1(%arg0: i32) -> (i32, i32) {
    %c0_i32 = arith.constant 0 : i32
    %c0_i32_0 = arith.constant 0 : i32
    %c0_i32_1 = arith.constant 0 : i32
    return %c0_i32, %c0_i32_0 : i32, i32
  }
  func.func @transform_2(%arg0: i32) -> (i32, i32) {
    %c0_i32 = arith.constant 0 : i32
    %c0_i32_0 = arith.constant 0 : i32
    %c0_i32_1 = arith.constant 0 : i32
    return %c0_i32, %c0_i32_0 : i32, i32
  }
  func.func @transform_3(%arg0: i32) -> (i32, i32) {
    %c0_i32 = arith.constant 0 : i32
    %c0_i32_0 = arith.constant 0 : i32
    %c0_i32_1 = arith.constant 0 : i32
    return %c0_i32, %c0_i32_0 : i32, i32
  }
  func.func @transform_4(%arg0: i32) -> (i32, i32) {
    %c0_i32 = arith.constant 0 : i32
    %c0_i32_0 = arith.constant 0 : i32
    %c0_i32_1 = arith.constant 0 : i32
    return %c0_i32, %c0_i32_0 : i32, i32
  }
}

module attributes {stable_mosaic.version = 11 : i64} {
  func.func @_matmul_cols_kernel(%arg0: i32, %arg1: memref<2x1024xf32, #tpu.memory_space<vmem>>, %arg2: memref<1024x128xf32, #tpu.memory_space<vmem>>, %arg3: memref<2x128xf32, #tpu.memory_space<vmem>>) attributes {dimension_semantics = [#tpu.dimension_semantics<parallel>], iteration_bounds = array<i64: 2>, scalar_prefetch = 0 : i64, scratch_operands = 0 : i64, tpu.core_type = #tpu.core_type<tc>, window_params = [{pipeline_mode = #tpu.pipeline_mode<synchronous>, transform_indices = @transform_0, window_bounds = array<i64: 2, 1024>}, {transform_indices = @transform_1, window_bounds = array<i64: 1024, 128>}, {transform_indices = @transform_2, window_bounds = array<i64: 2, 128>}]} {
    %c0 = arith.constant 0 : index
    %c0_0 = arith.constant 0 : index
    %0 = vector.load %arg1[%c0, %c0_0] : memref<2x1024xf32, #tpu.memory_space<vmem>>, vector<2x1024xf32>
    %c0_1 = arith.constant 0 : index
    %c0_2 = arith.constant 0 : index
    %1 = vector.load %arg2[%c0_1, %c0_2] : memref<1024x128xf32, #tpu.memory_space<vmem>>, vector<1024x128xf32>
    %cst = arith.constant dense<0.000000e+00> : vector<2x128xf32>
    %2 = tpu.matmul %0, %1, %cst {dimension_numbers = #tpu.dot_dimension_numbers<[1], [0], [0], [1], [0, 0, 1, 1], [], []>} : vector<2x1024xf32>, vector<1024x128xf32>, vector<2x128xf32> -> vector<2x128xf32>
    %c0_3 = arith.constant 0 : index
    %c0_4 = arith.constant 0 : index
    %3 = vector.load %arg3[%c0_3, %c0_4] : memref<2x128xf32, #tpu.memory_space<vmem>>, vector<2x128xf32>
    tpu.vector_store %arg3[%c0_3, %c0_4], %2 {strides = array<i32>} : memref<2x128xf32, #tpu.memory_space<vmem>>, vector<2x128xf32>,
    return
  }
  func.func @transform_0(%arg0: i32) -> (i32, i32) {
    %c0_i32 = arith.constant 0 : i32
    %c0_i32_0 = arith.constant 0 : i32
    %c0_i32_1 = arith.constant 0 : i32
    return %c0_i32, %c0_i32_0 : i32, i32
  }
  func.func @transform_1(%arg0: i32) -> (i32, i32) {
    %c0_i32 = arith.constant 0 : i32
    %c0_i32_0 = arith.constant 0 : i32
    return %c0_i32, %arg0 : i32, i32
  }
  func.func @transform_2(%arg0: i32) -> (i32, i32) {
    %c0_i32 = arith.constant 0 : i32
    %c0_i32_0 = arith.constant 0 : i32
    return %c0_i32, %arg0 : i32, i32
  }
}

module attributes {stable_mosaic.version = 11 : i64} {
  func.func @_vlad_kernel(%arg0: i32, %arg1: memref<1x16x16xf32, #tpu.memory_space<vmem>>, %arg2: memref<1x64x16xf32, #tpu.memory_space<vmem>>, %arg3: memref<64x16xf32, #tpu.memory_space<vmem>>, %arg4: memref<1x64x16xf32, #tpu.memory_space<vmem>>) attributes {dimension_semantics = [#tpu.dimension_semantics<parallel>], iteration_bounds = array<i64: 2>, scalar_prefetch = 0 : i64, scratch_operands = 0 : i64, tpu.core_type = #tpu.core_type<tc>, window_params = [{transform_indices = @transform_0, window_bounds = array<i64: 1, 16, 16>}, {transform_indices = @transform_1, window_bounds = array<i64: 1, 64, 16>}, {pipeline_mode = #tpu.pipeline_mode<synchronous>, transform_indices = @transform_2, window_bounds = array<i64: 64, 16>}, {transform_indices = @transform_3, window_bounds = array<i64: 1, 64, 16>}]} {
    %c0 = arith.constant 0 : index
    %c0_0 = arith.constant 0 : index
    %c0_1 = arith.constant 0 : index
    %0 = vector.load %arg1[%c0, %c0_0, %c0_1] : memref<1x16x16xf32, #tpu.memory_space<vmem>>, vector<1x16x16xf32>
    %1 = vector.shape_cast %0 : vector<1x16x16xf32> to vector<16x16xf32>
    %c0_2 = arith.constant 0 : index
    %c0_3 = arith.constant 0 : index
    %c0_4 = arith.constant 0 : index
    %2 = vector.load %arg2[%c0_2, %c0_3, %c0_4] : memref<1x64x16xf32, #tpu.memory_space<vmem>>, vector<1x64x16xf32>
    %3 = vector.shape_cast %2 : vector<1x64x16xf32> to vector<64x16xf32>
    %cst = arith.constant dense<0.000000e+00> : vector<16xf32>
    %4 = vector.multi_reduction <add>, %1, %cst [0] : vector<16x16xf32> to vector<16xf32>
    %5 = vector.shape_cast %4 : vector<16xf32> to vector<1x16xf32>
    %cst_5 = arith.constant dense<0.000000e+00> : vector<64x16xf32>
    %6 = tpu.matmul %3, %1, %cst_5 {dimension_numbers = #tpu.dot_dimension_numbers<[1], [0], [0], [1], [0, 0, 1, 1], [], []>} : vector<64x16xf32>, vector<16x16xf32>, vector<64x16xf32> -> vector<64x16xf32>
    %c0_6 = arith.constant 0 : index
    %c0_7 = arith.constant 0 : index
    %7 = vector.load %arg3[%c0_6, %c0_7] : memref<64x16xf32, #tpu.memory_space<vmem>>, vector<64x16xf32>
    %8 = vector.broadcast %5 : vector<1x16xf32> to vector<64x16xf32>
    %9 = arith.mulf %8, %7 : vector<64x16xf32>
    %10 = arith.subf %6, %9 : vector<64x16xf32>
    %11 = arith.mulf %10, %10 : vector<64x16xf32>
    %cst_8 = arith.constant dense<0.000000e+00> : vector<16xf32>
    %12 = vector.multi_reduction <add>, %11, %cst_8 [0] : vector<64x16xf32> to vector<16xf32>
    %13 = vector.shape_cast %12 : vector<16xf32> to vector<1x16xf32>
    %14 = math.sqrt %13 : vector<1x16xf32>
    %cst_9 = arith.constant 9.99999996E-13 : f32
    %15 = vector.broadcast %cst_9 : f32 to vector<1x16xf32>
    %16 = arith.maximumf %14, %15 : vector<1x16xf32>
    %17 = vector.broadcast %16 : vector<1x16xf32> to vector<64x16xf32>
    %18 = arith.divf %10, %17 : vector<64x16xf32>
    %19 = arith.mulf %18, %18 : vector<64x16xf32>
    %cst_10 = arith.constant dense<0.000000e+00> : vector<64xf32>
    %20 = vector.multi_reduction <add>, %19, %cst_10 [1] : vector<64x16xf32> to vector<64xf32>
    %21 = vector.shape_cast %20 : vector<64xf32> to vector<64x1xf32>
    %cst_11 = arith.constant dense<0.000000e+00> : vector<1xf32>
    %22 = vector.multi_reduction <add>, %21, %cst_11 [0] : vector<64x1xf32> to vector<1xf32>
    %23 = vector.shape_cast %22 : vector<1xf32> to vector<1x1xf32>
    %24 = math.sqrt %23 : vector<1x1xf32>
    %cst_12 = arith.constant 9.99999996E-13 : f32
    %25 = vector.broadcast %cst_12 : f32 to vector<1x1xf32>
    %26 = arith.maximumf %24, %25 : vector<1x1xf32>
    %27 = vector.broadcast %26 : vector<1x1xf32> to vector<64x16xf32>
    %28 = arith.divf %18, %27 : vector<64x16xf32>
    %c0_13 = arith.constant 0 : index
    %c0_14 = arith.constant 0 : index
    %c0_15 = arith.constant 0 : index
    %29 = vector.load %arg4[%c0_13, %c0_14, %c0_15] : memref<1x64x16xf32, #tpu.memory_space<vmem>>, vector<1x64x16xf32>
    %30 = vector.shape_cast %29 : vector<1x64x16xf32> to vector<64x16xf32>
    %31 = vector.shape_cast %28 : vector<64x16xf32> to vector<1x64x16xf32>
    tpu.vector_store %arg4[%c0_13, %c0_14, %c0_15], %31 {strides = array<i32>} : memref<1x64x16xf32, #tpu.memory_space<vmem>>, vector<1x64x16xf32>,
    return
  }
  func.func @transform_0(%arg0: i32) -> (i32, i32, i32) {
    %c0_i32 = arith.constant 0 : i32
    %c0_i32_0 = arith.constant 0 : i32
    %c0_i32_1 = arith.constant 0 : i32
    return %arg0, %c0_i32, %c0_i32_0 : i32, i32, i32
  }
  func.func @transform_1(%arg0: i32) -> (i32, i32, i32) {
    %c0_i32 = arith.constant 0 : i32
    %c0_i32_0 = arith.constant 0 : i32
    %c0_i32_1 = arith.constant 0 : i32
    return %arg0, %c0_i32, %c0_i32_0 : i32, i32, i32
  }
  func.func @transform_2(%arg0: i32) -> (i32, i32) {
    %c0_i32 = arith.constant 0 : i32
    %c0_i32_0 = arith.constant 0 : i32
    %c0_i32_1 = arith.constant 0 : i32
    return %c0_i32, %c0_i32_0 : i32, i32
  }
  func.func @transform_3(%arg0: i32) -> (i32, i32, i32) {
    %c0_i32 = arith.constant 0 : i32
    %c0_i32_0 = arith.constant 0 : i32
    %c0_i32_1 = arith.constant 0 : i32
    return %arg0, %c0_i32, %c0_i32_0 : i32, i32, i32
  }
}

module attributes {stable_mosaic.version = 11 : i64} {
  func.func @_gating_bn_kernel(%arg0: i32, %arg1: memref<2x256xf32, #tpu.memory_space<vmem>>, %arg2: memref<256x128xf32, #tpu.memory_space<vmem>>, %arg3: memref<1x256xf32, #tpu.memory_space<vmem>>, %arg4: memref<1x256xf32, #tpu.memory_space<vmem>>, %arg5: memref<2x128xf32, #tpu.memory_space<vmem>>) attributes {dimension_semantics = [#tpu.dimension_semantics<parallel>], iteration_bounds = array<i64: 2>, scalar_prefetch = 0 : i64, scratch_operands = 0 : i64, tpu.core_type = #tpu.core_type<tc>, window_params = [{pipeline_mode = #tpu.pipeline_mode<synchronous>, transform_indices = @transform_0, window_bounds = array<i64: 2, 256>}, {transform_indices = @transform_1, window_bounds = array<i64: 256, 128>}, {pipeline_mode = #tpu.pipeline_mode<synchronous>, transform_indices = @transform_2, window_bounds = array<i64: 1, 256>}, {pipeline_mode = #tpu.pipeline_mode<synchronous>, transform_indices = @transform_3, window_bounds = array<i64: 1, 256>}, {transform_indices = @transform_4, window_bounds = array<i64: 2, 128>}]} {
    %c128_i32 = arith.constant 128 : i32
    %0 = arith.muli %arg0, %c128_i32 : i32
    %1 = tpu.assume_multiple %0, 128 : i32
    %c0 = arith.constant 0 : index
    %c0_0 = arith.constant 0 : index
    %2 = vector.load %arg1[%c0, %c0_0] : memref<2x256xf32, #tpu.memory_space<vmem>>, vector<2x256xf32>
    %c0_1 = arith.constant 0 : index
    %c0_2 = arith.constant 0 : index
    %3 = vector.load %arg2[%c0_1, %c0_2] : memref<256x128xf32, #tpu.memory_space<vmem>>, vector<256x128xf32>
    %cst = arith.constant dense<0.000000e+00> : vector<2x128xf32>
    %4 = tpu.matmul %2, %3, %cst {dimension_numbers = #tpu.dot_dimension_numbers<[1], [0], [0], [1], [0, 0, 1, 1], [], []>} : vector<2x256xf32>, vector<256x128xf32>, vector<2x128xf32> -> vector<2x128xf32>
    %cst_3 = arith.constant dense<0.000000e+00> : vector<128xf32>
    %5 = vector.multi_reduction <add>, %4, %cst_3 [0] : vector<2x128xf32> to vector<128xf32>
    %6 = vector.shape_cast %5 : vector<128xf32> to vector<1x128xf32>
    %cst_4 = arith.constant 2.000000e+00 : f32
    %7 = vector.broadcast %cst_4 : f32 to vector<1x128xf32>
    %8 = arith.divf %6, %7 : vector<1x128xf32>
    %9 = arith.mulf %4, %4 : vector<2x128xf32>
    %cst_5 = arith.constant dense<0.000000e+00> : vector<128xf32>
    %10 = vector.multi_reduction <add>, %9, %cst_5 [0] : vector<2x128xf32> to vector<128xf32>
    %11 = vector.shape_cast %10 : vector<128xf32> to vector<1x128xf32>
    %cst_6 = arith.constant 2.000000e+00 : f32
    %12 = vector.broadcast %cst_6 : f32 to vector<1x128xf32>
    %13 = arith.divf %11, %12 : vector<1x128xf32>
    %14 = arith.mulf %8, %8 : vector<1x128xf32>
    %15 = arith.subf %13, %14 : vector<1x128xf32>
    %cst_7 = arith.constant 0.000000e+00 : f32
    %16 = vector.broadcast %cst_7 : f32 to vector<1x128xf32>
    %17 = arith.maximumf %15, %16 : vector<1x128xf32>
    %c0_8 = arith.constant 0 : index
    %18 = arith.index_cast %1 : i32 to index
    %19 = vector.load %arg3[%c0_8, %18] : memref<1x256xf32, #tpu.memory_space<vmem>>, vector<1x128xf32>
    %cst_9 = arith.constant 9.99999974E-6 : f32
    %20 = vector.broadcast %cst_9 : f32 to vector<1x128xf32>
    %21 = arith.addf %17, %20 : vector<1x128xf32>
    %22 = math.rsqrt %21 : vector<1x128xf32>
    %23 = arith.mulf %19, %22 : vector<1x128xf32>
    %24 = vector.broadcast %8 : vector<1x128xf32> to vector<2x128xf32>
    %25 = arith.subf %4, %24 : vector<2x128xf32>
    %26 = vector.broadcast %23 : vector<1x128xf32> to vector<2x128xf32>
    %27 = arith.mulf %25, %26 : vector<2x128xf32>
    %c0_10 = arith.constant 0 : index
    %28 = arith.index_cast %1 : i32 to index
    %29 = vector.load %arg4[%c0_10, %28] : memref<1x256xf32, #tpu.memory_space<vmem>>, vector<1x128xf32>
    %30 = vector.broadcast %29 : vector<1x128xf32> to vector<2x128xf32>
    %31 = arith.addf %27, %30 : vector<2x128xf32>
    %32 = arith.negf %31 : vector<2x128xf32>
    %33 = math.exp %32 : vector<2x128xf32>
    %cst_11 = arith.constant 1.000000e+00 : f32
    %34 = vector.broadcast %cst_11 : f32 to vector<2x128xf32>
    %35 = arith.addf %34, %33 : vector<2x128xf32>
    %36 = arith.divf %34, %35 : vector<2x128xf32>
    %c0_12 = arith.constant 0 : index
    %37 = arith.index_cast %1 : i32 to index
    %38 = vector.load %arg1[%c0_12, %37] : memref<2x256xf32, #tpu.memory_space<vmem>>, vector<2x128xf32>
    %39 = arith.mulf %38, %36 : vector<2x128xf32>
    %c0_13 = arith.constant 0 : index
    %c0_14 = arith.constant 0 : index
    %40 = vector.load %arg5[%c0_13, %c0_14] : memref<2x128xf32, #tpu.memory_space<vmem>>, vector<2x128xf32>
    tpu.vector_store %arg5[%c0_13, %c0_14], %39 {strides = array<i32>} : memref<2x128xf32, #tpu.memory_space<vmem>>, vector<2x128xf32>,
    return
  }
  func.func @transform_0(%arg0: i32) -> (i32, i32) {
    %c0_i32 = arith.constant 0 : i32
    %c0_i32_0 = arith.constant 0 : i32
    %c0_i32_1 = arith.constant 0 : i32
    return %c0_i32, %c0_i32_0 : i32, i32
  }
  func.func @transform_1(%arg0: i32) -> (i32, i32) {
    %c0_i32 = arith.constant 0 : i32
    %c0_i32_0 = arith.constant 0 : i32
    return %c0_i32, %arg0 : i32, i32
  }
  func.func @transform_2(%arg0: i32) -> (i32, i32) {
    %c0_i32 = arith.constant 0 : i32
    %c0_i32_0 = arith.constant 0 : i32
    %c0_i32_1 = arith.constant 0 : i32
    return %c0_i32, %c0_i32_0 : i32, i32
  }
  func.func @transform_3(%arg0: i32) -> (i32, i32) {
    %c0_i32 = arith.constant 0 : i32
    %c0_i32_0 = arith.constant 0 : i32
    %c0_i32_1 = arith.constant 0 : i32
    return %c0_i32, %c0_i32_0 : i32, i32
  }
  func.func @transform_4(%arg0: i32) -> (i32, i32) {
    %c0_i32 = arith.constant 0 : i32
    %c0_i32_0 = arith.constant 0 : i32
    return %c0_i32, %arg0 : i32, i32
  }
}

</mosaic_0001>

<bundles_post_ra>
// kernel: netvlad_loupe_forward.5
= control target key start
LH: loop header
LB: loop body
LE: loop exit
PB: predicated region body
PF: predicated region fallthrough
CT: control target
= control target key end

     0   :  { %s647_s12 = smov 0   ;;  %s768_s0 = inlined_call_operand.vmem [shape: f32[2,16,16], index: 0, kind: input, shape index: {}]   ;;  %s769_s1 = inlined_call_operand.vmem [shape: f32[2,64,16], index: 1, kind: input, shape index: {}]   ;;  %s770_s2 = inlined_call_operand.vmem [shape: f32[64,16], index: 2, kind: input, shape index: {}]   ;;  %s771_s3 = inlined_call_operand.vmem [shape: f32[2,64,16], index: 3, kind: output, shape index: {}]  }
   0x1 LB: > { %s547_s13 = sadd.s32 4294967295, %s625_s12   ;;  %p551_p0 = scmp.ge.s32.totalorder %s625_s12, 1  ;;  %s625_s12 = sphi %s647_s12, %s13_s12  }
   0x2   : > { %p147_p1 = scmp.lt.s32.totalorder %s625_s12, 3 }
   0x4   : > { %p148_p2 = pnand %p551_p0, %p147_p1 }
   0x5   : > { %p176_p3 = scmp.lt.s32.totalorder (!%p148_p2), %s547_s13, 1  ;;  %vm201_vm0 = vcmask (!%p148_p2), 130048   ;;  %v341_v20 = vld [vmem:[%s770_s2 + $0x8] sm:$0xff] (!%p148_p2)  ;;  %v340_v22 = vld [vmem:[%s770_s2] sm:$0xff] (!%p148_p2)  ;;  %v343_v27 = vld [vmem:[%s770_s2 + $0x18] sm:$0xff] (!%p148_p2) }
   0x6   : > { %151 = sbr.rel (%p148_p2) target bundleno = 508 (0x1fc), region = 32  ;;  %v345_v21 = vld [vmem:[%s770_s2 + $0x28] sm:$0xff] (!%p148_p2)  ;;  %v344_v23 = vld [vmem:[%s770_s2 + $0x20] sm:$0xff] (!%p148_p2)  ;;  %v347_v29 = vld [vmem:[%s770_s2 + $0x38] sm:$0xff] (!%p148_p2) }
   0x7   : > { %v342_v30 = vld [vmem:[%s770_s2 + $0x10] sm:$0xff] (!%p148_p2) }
   0x8   : > { %v346_v31 = vld [vmem:[%s770_s2 + $0x30] sm:$0xff] (!%p148_p2) }
   0xd   : > { %s773_s13 = smov (!%p176_p3, %s547_s13), 1 }
   0xe   : > { %s568_s14 = sshll.u32 %s773_s13, 4  ;;  %s569_s15 = sshll.u32 %s773_s13, 6 }
   0xf   : > { %s180_s18 = scalar_lea.vmem %s768_s0, %s568_s14  ;;  %s185_s21 = scalar_lea.vmem %s769_s1, %s569_s15 }
  0x10   : > { %v191_v0 = vld [vmem:[%s180_s18] sm:$0xff]  ;;  %v192_v1 = vld [vmem:[%s180_s18 + $0x8] sm:$0xff]  ;;  %v195_v10 = vld [vmem:[%s185_s21 + $0x10] sm:$0xff]  ;;  %s190_s16 = scalar_lea.vmem %s771_s3, %s569_s15 }
  0x11   : > { %v193_v2 = vld [vmem:[%s185_s21] sm:$0xff]  ;;  %v202_v3 = vsel %vm201_vm0, %v191_v0, 0.0  ;;  %v203_v4 = vsel %vm201_vm0, %v192_v1, 0.0  ;;  %v597_v5 = vpack.c.bf16 %v192_v1, %v191_v0  ;;  %v194_v8 = vld [vmem:[%s185_s21 + $0x8] sm:$0xff]  ;;  %v199_v11 = vld [vmem:[%s185_s21 + $0x30] sm:$0xff] }
  0x12   : > { %585 = vmatprep.mubr.msk.f32.mxu0 %vm201_vm0, %v193_v2  ;;  %v204_v6 = vadd.f32 %v203_v4, %v202_v3  ;;  %v197_v7 = vld [vmem:[%s185_s21 + $0x20] sm:$0xff]  ;;  %v198_v9 = vld [vmem:[%s185_s21 + $0x28] sm:$0xff]  ;;  %v196_v12 = vld [vmem:[%s185_s21 + $0x18] sm:$0xff] }
  0x13   : > { %598 = vmatprep.subr.bf16.mxu0 %v597_v5  ;;  %601 = vmatprep.subr.bf16.mxu1 %v597_v5  ;;  %v200_v13 = vld [vmem:[%s185_s21 + $0x38] sm:$0xff] }
  0x14   : > { %600 = vmatpush3.bf16.msra.mxu0 %v597_v5  ;;  %602 = vmatpush3.bf16.msra.mxu1 %v597_v5  ;;  %v205_v14 = vrot.slane %v204_v6, 4 }
  0x15   : > { %591 = vmatprep.mubr.msk.f32.mxu1 %vm201_vm0, %v197_v7 }
  0x16   : > { %v206_v15 = vadd.f32 %v205_v14, %v204_v6 }
  0x17   : > { %586 = vmatmul.mubr.msk.f32.vlgmr.msra.gmra.mrb[0].mxu0 %vm201_vm0, %v194_v8  ;;  %592 = vmatmul.mubr.msk.f32.vlgmr.msra.gmra.mrb[0].mxu1 %vm201_vm0, %v198_v9 }
  0x18   : > { %588 = vmatprep.mubr.msk.f32.mxu0 %vm201_vm0, %v195_v10  ;;  %594 = vmatprep.mubr.msk.f32.mxu1 %vm201_vm0, %v199_v11  ;;  %v207_v16 = vrot.slane %v206_v15, 2 }
  0x1a   : > { %v208_v17 = vadd.f32 %v207_v16, %v206_v15 }
  0x1b   : > { %589 = vmatmul.mubr.msk.f32.gmra.mrb[2].mxu0 %vm201_vm0, %v196_v12  ;;  %595 = vmatmul.mubr.msk.f32.gmra.mrb[2].mxu1 %vm201_vm0, %v200_v13 }
  0x1c   : > { %v209_v18 = vrot.slane %v208_v17, 1 }
  0x1e   : > { %v210_v19 = vadd.f32 %v209_v18, %v208_v17 }
  0x20   : > { %v349_v24 = vmul.f32 %v341_v20, %v210_v19  ;;  %v353_v25 = vmul.f32 %v345_v21, %v210_v19  ;;  %v348_v26 = vmul.f32 %v340_v22, %v210_v19  ;;  %v352_v28 = vmul.f32 %v344_v23, %v210_v19 }
  0x21   : > { %v351_v36 = vmul.f32 %v343_v27, %v210_v19  ;;  %v355_v39 = vmul.f32 %v347_v29, %v210_v19  ;;  %v350_v41 = vmul.f32 %v342_v30, %v210_v19  ;;  %v354_v43 = vmul.f32 %v346_v31, %v210_v19 }
  0xea   : > { %v587_v32 = vpop.f32.mrb[0].mxu0  ;;  %v593_v33 = vpop.f32.mrb[0].mxu1 }
  0xeb   : > { %v357_v34 = vsub.f32 %v587_v32, %v349_v24  ;;  %v301_v35 = vpop.f32.mrb[1].mxu0  ;;  %v361_v37 = vsub.f32 %v593_v33, %v353_v25  ;;  %v321_v38 = vpop.f32.mrb[1].mxu1 }
  0xec   : > { %v356_v40 = vsub.f32 %v301_v35, %v348_v26  ;;  %v360_v42 = vsub.f32 %v321_v38, %v352_v28 }
  0xed   : > { %v365_v44 = vmul.f32 %v357_v34, %v357_v34  ;;  %v369_v63 = vmul.f32 %v361_v37, %v361_v37 }
  0xee   : > { %v364_v45 = vmul.f32 %v356_v40, %v356_v40  ;;  %v590_v46 = vpop.f32.mrb[2].mxu0  ;;  %v596_v47 = vpop.f32.mrb[2].mxu1  ;;  %v368_v59 = vmul.f32 %v360_v42, %v360_v42 }
  0xef   : > { %v373_v48 = vsel %vm201_vm0, %v365_v44, 0.0  ;;  %v359_v49 = vsub.f32 %v590_v46, %v351_v36  ;;  %v311_v50 = vpop.f32.mrb[3].mxu0  ;;  %v363_v51 = vsub.f32 %v596_v47, %v355_v39  ;;  %v331_v52 = vpop.f32.mrb[3].mxu1  ;;  %v381_v4 = vsel %vm201_vm0, %v369_v63, 0.0 }
  0xf0   : > { %v372_v53 = vsel %vm201_vm0, %v364_v45, 0.0  ;;  %v358_v54 = vsub.f32 %v311_v50, %v350_v41  ;;  %v362_v55 = vsub.f32 %v331_v52, %v354_v43  ;;  %v379_v0 = vsel %vm201_vm0, %v368_v59, 0.0 }
  0xf1   : > { %v374_v56 = vadd.f32 %v373_v48, %v372_v53  ;;  %v367_v57 = vmul.f32 %v359_v49, %v359_v49  ;;  %v371_v5 = vmul.f32 %v363_v51, %v363_v51 }
  0xf2   : > { %v366_v58 = vmul.f32 %v358_v54, %v358_v54  ;;  %v370_v1 = vmul.f32 %v362_v55, %v362_v55 }
  0xf3   : > { %v377_v62 = vsel %vm201_vm0, %v367_v57, 0.0  ;;  %v385_v9 = vsel %vm201_vm0, %v371_v5, 0.0 }
  0xf4   : > { %v375_v60 = vsel %vm201_vm0, %v366_v58, 0.0  ;;  %v383_v6 = vsel %vm201_vm0, %v370_v1, 0.0 }
  0xf5   : > { %v376_v61 = vadd.f32 %v375_v60, %v374_v56 }
  0xf7   : > { %v378_v2 = vadd.f32 %v377_v62, %v376_v61 }
  0xf9   : > { %v380_v3 = vadd.f32 %v379_v0, %v378_v2 }
  0xfb   : > { %v382_v7 = vadd.f32 %v381_v4, %v380_v3 }
  0xfd   : > { %v384_v8 = vadd.f32 %v383_v6, %v382_v7 }
  0xff   : > { %v386_v10 = vadd.f32 %v385_v9, %v384_v8 }
 0x101   : > { %v387_v11 = vrot.slane %v386_v10, 4 }
 0x103   : > { %v388_v12 = vadd.f32 %v387_v11, %v386_v10 }
 0x105   : > { %v389_v13 = vrot.slane %v388_v12, 2 }
 0x107   : > { %v390_v14 = vadd.f32 %v389_v13, %v388_v12 }
 0x109   : > { %v391_v15 = vrot.slane %v390_v14, 1 }
 0x10b   : > { %v392_v16 = vadd.f32 %v391_v15, %v390_v14 }
 0x10d   : > { %611 = vrsqrt.f32 %v392_v16  ;;  %vm395_vm1 = vcmp.eq.f32.partialorder %v392_v16, inf  ;;  %v398_v19 = vand.u32 2147483648, %v392_v16  ;;  %vm397_vm2 = vcmp.eq.f32.partialorder %v392_v16, 0.0 }
 0x117   : > { %v612_v17 = vpop.eup %611 }
 0x118   : > { %v394_v18 = vmul.f32 %v612_v17, %v392_v16 }
 0x11a   : > { %v396_v20 = vsel %vm395_vm1, %v392_v16, %v394_v18 }
 0x11b   : > { %v399_v21 = vsel %vm397_vm2, %v398_v19, %v396_v20 }
 0x11c   : > { %v400_v22 = vmax.f32 %v399_v21, 1e-12 }
 0x11e   : > { %613 = vrcp.f32 %v400_v22 }
 0x128   : > { %v614_v23 = vpop.eup %613 }
 0x129   : > { %v709_v24 = vmul.f32 %v614_v23, %v362_v55  ;;  %v711_v25 = vmul.f32 %v614_v23, %v358_v54  ;;  %v713_v26 = vmul.f32 %v614_v23, %v356_v40  ;;  %v715_v27 = vmul.f32 %v614_v23, %v359_v49 }
 0x12a   : > { %v403_v28 = vmul.f32 %v614_v23, %v357_v34  ;;  %v717_v29 = vmul.f32 %v614_v23, %v361_v37  ;;  %v719_v30 = vmul.f32 %v614_v23, %v360_v42  ;;  %v721_v31 = vmul.f32 %v614_v23, %v363_v51 }
 0x12b   : > { %v412_v32 = vmul.f32 %v711_v25, %v711_v25  ;;  %v410_v33 = vmul.f32 %v713_v26, %v713_v26  ;;  %v413_v38 = vmul.f32 %v715_v27, %v715_v27  ;;  %v416_v45 = vmul.f32 %v709_v24, %v709_v24 }
 0x12c   : > { %v411_v34 = vmul.f32 %v403_v28, %v403_v28  ;;  %v415_v40 = vmul.f32 %v717_v29, %v717_v29  ;;  %v414_v41 = vmul.f32 %v719_v30, %v719_v30  ;;  %v417_v44 = vmul.f32 %v721_v31, %v721_v31 }
 0x12d   : > { %v424_v35 = vsel %vm201_vm0, %v412_v32, 0.0  ;;  %v418_v36 = vsel %vm201_vm0, %v410_v33, 0.0  ;;  %v427_v37 = vsel %vm201_vm0, %v413_v38, 0.0  ;;  %v436_v47 = vsel %vm201_vm0, %v416_v45, 0.0 }
 0x12e   : > { %425 = vadd.xlane.f32.xlu1 %v424_v35  ;;  %419 = vadd.xlane.f32.xlu0 %v418_v36  ;;  %v421_v39 = vsel %vm201_vm0, %v411_v34, 0.0  ;;  %v433_v42 = vsel %vm201_vm0, %v415_v40, 0.0  ;;  %v430_v43 = vsel %vm201_vm0, %v414_v41, 0.0  ;;  %v439_v46 = vsel %vm201_vm0, %v417_v44, 0.0 }
 0x132   : > { %428 = vadd.xlane.f32.xlu1 %v427_v37  ;;  %422 = vadd.xlane.f32.xlu0 %v421_v39 }
 0x136   : > { %434 = vadd.xlane.f32.xlu1 %v433_v42  ;;  %431 = vadd.xlane.f32.xlu0 %v430_v43 }
 0x13a   : > { %440 = vadd.xlane.f32.xlu1 %v439_v46  ;;  %437 = vadd.xlane.f32.xlu0 %v436_v47 }
 0x1bb   : > { %v426_v48 = vpop.xlane.xlu1 %425  ;;  %v420_v49 = vpop.xlane.xlu0 %419 }
 0x1bf   : > { %v429_v50 = vpop.xlane.xlu1 %428  ;;  %v423_v51 = vpop.xlane.xlu0 %422 }
 0x1c0   : > { %v442_v52 = vadd.f32 %v423_v51, %v420_v49 }
 0x1c2   : > { %v443_v53 = vadd.f32 %v442_v52, %v426_v48 }
 0x1c3   : > { %v432_v54 = vpop.xlane.xlu0 %431  ;;  %v435_v56 = vpop.xlane.xlu1 %434 }
 0x1c4   : > { %v444_v55 = vadd.f32 %v443_v53, %v429_v50 }
 0x1c6   : > { %v445_v57 = vadd.f32 %v444_v55, %v432_v54 }
 0x1c7   : > { %v438_v59 = vpop.xlane.xlu0 %437  ;;  %v441_v61 = vpop.xlane.xlu1 %440 }
 0x1c8   : > { %v446_v58 = vadd.f32 %v445_v57, %v435_v56 }
 0x1ca   : > { %v447_v60 = vadd.f32 %v446_v58, %v438_v59 }
 0x1cc   : > { %v448_v62 = vadd.f32 %v447_v60, %v441_v61 }
 0x1ce   : > { %v449_v63 = vrot.slane %v448_v62, 4 }
 0x1d0   : > { %v450_v0 = vadd.f32 %v449_v63, %v448_v62 }
 0x1d2   : > { %v451_v1 = vrot.slane %v450_v0, 2 }
 0x1d4   : > { %v452_v2 = vadd.f32 %v451_v1, %v450_v0 }
 0x1d6   : > { %v453_v3 = vrot.slane %v452_v2, 1 }
 0x1d8   : > { %v454_v4 = vadd.f32 %v453_v3, %v452_v2 }
 0x1da   : > { %615 = vrsqrt.f32 %v454_v4  ;;  %vm457_vm3 = vcmp.eq.f32.partialorder %v454_v4, inf  ;;  %v460_v7 = vand.u32 2147483648, %v454_v4  ;;  %vm459_vm4 = vcmp.eq.f32.partialorder %v454_v4, 0.0 }
 0x1e4   : > { %v616_v5 = vpop.eup %615 }
 0x1e5   : > { %v456_v6 = vmul.f32 %v616_v5, %v454_v4 }
 0x1e7   : > { %v458_v8 = vsel %vm457_vm3, %v454_v4, %v456_v6 }
 0x1e8   : > { %v461_v9 = vsel %vm459_vm4, %v460_v7, %v458_v8 }
 0x1e9   : > { %v462_v10 = vmax.f32 %v461_v9, 1e-12 }
 0x1eb   : > { %617 = vrcp.f32 %v462_v10 }
 0x1f5   : > { %v618_v11 = vpop.eup %617 }
 0x1f6   : > { %v464_v12 = vmul.f32 %v618_v11, %v713_v26  ;;  %v465_v13 = vmul.f32 %v618_v11, %v403_v28  ;;  %v466_v14 = vmul.f32 %v618_v11, %v711_v25  ;;  %v467_v15 = vmul.f32 %v618_v11, %v715_v27 }
 0x1f7   : > { %v468_v16 = vmul.f32 %v618_v11, %v719_v30  ;;  %v469_v17 = vmul.f32 %v618_v11, %v717_v29  ;;  %v470_v18 = vmul.f32 %v618_v11, %v709_v24  ;;  %v471_v19 = vmul.f32 %v618_v11, %v721_v31 }
 0x1f8   : > { %472 = vst.msk [vmem:[%s190_s16] sm:$0xff] %vm201_vm0, %v464_v12  ;;  %473 = vst.msk [vmem:[%s190_s16 + $0x8] sm:$0xff] %vm201_vm0, %v465_v13 }
 0x1f9   : > { %474 = vst.msk [vmem:[%s190_s16 + $0x10] sm:$0xff] %vm201_vm0, %v466_v14  ;;  %475 = vst.msk [vmem:[%s190_s16 + $0x18] sm:$0xff] %vm201_vm0, %v467_v15 }
 0x1fa   : > { %476 = vst.msk [vmem:[%s190_s16 + $0x20] sm:$0xff] %vm201_vm0, %v468_v16  ;;  %477 = vst.msk [vmem:[%s190_s16 + $0x28] sm:$0xff] %vm201_vm0, %v469_v17 }
 0x1fb   : > { %478 = vst.msk [vmem:[%s190_s16 + $0x30] sm:$0xff] %vm201_vm0, %v470_v18  ;;  %479 = vst.msk [vmem:[%s190_s16 + $0x38] sm:$0xff] %vm201_vm0, %v471_v19 }
 0x1fc PF: > { %s13_s12 = sadd.s32 1, %s625_s12  }
 0x1fd   : > { %p10_p4 = scmp.ge.s32.totalorder %s13_s12, 4  }
 0x1ff   :  { %12 = sbr.rel (!%p10_p4) target bundleno = 1 (0x1), region = 65 }

// kernel: netvlad_loupe_forward.4
= control target key start
LH: loop header
LB: loop body
LE: loop exit
PB: predicated region body
PF: predicated region fallthrough
CT: control target
= control target key end

     0   :  { %vm29_vm0 = vcmask 523264   ;;  %vm127_vm1 = vcmask 130048   ;;  %v173_v60 = vlaneseq  ;;  %s429_s1 = inlined_call_operand.vmem [shape: f32[64,16], index: 1, kind: input, shape index: {}]   ;;  %s430_s0 = inlined_call_operand.vmem [shape: f32[32,64], index: 0, kind: input, shape index: {}]   ;;  %s431_s2 = inlined_call_operand.vmem [shape: f32[1,16], index: 2, kind: input, shape index: {}]   ;;  %s432_s3 = inlined_call_operand.vmem [shape: f32[1,16], index: 3, kind: input, shape index: {}]   ;;  %s433_s4 = inlined_call_operand.vmem [shape: f32[32,16], index: 4, kind: output, shape index: {}]  }
   0x1   :  { %v21_v0 = vld [vmem:[%s429_s1] sm:$0xff]  ;;  %v22_v1 = vld [vmem:[%s429_s1 + $0x8] sm:$0xff]  ;;  %v23_v2 = vld [vmem:[%s429_s1 + $0x10] sm:$0xff] }
   0x2   :  { %v284_v3 = vpack.c.bf16 %v22_v1, %v21_v0  ;;  %v24_v4 = vld [vmem:[%s429_s1 + $0x18] sm:$0xff]  ;;  %v25_v6 = vld [vmem:[%s429_s1 + $0x20] sm:$0xff]  ;;  %v26_v7 = vld [vmem:[%s429_s1 + $0x28] sm:$0xff]  ;;  %v174_v61 = vshrl.u32 %v173_v60, 7 }
   0x3   :  { %v288_v5 = vpack.c.bf16 %v24_v4, %v23_v2  ;;  %v17_v8 = vld [vmem:[%s430_s0] sm:$0xff]  ;;  %v19_v9 = vld [vmem:[%s430_s0 + $0x10] sm:$0xff]  ;;  %v292_v10 = vpack.c.bf16 %v26_v7, %v25_v6  ;;  %v28_v12 = vld [vmem:[%s429_s1 + $0x38] sm:$0xff] }
   0x4   :  { %285 = vmatprep.subr.bf16.mxu0 %v284_v3  ;;  %300 = vmatprep.subr.bf16.mxu1 %v284_v3  ;;  %v27_v11 = vld [vmem:[%s429_s1 + $0x30] sm:$0xff]  ;;  %v18_v14 = vld [vmem:[%s430_s0 + $0x8] sm:$0xff]  ;;  %v20_v15 = vld [vmem:[%s430_s0 + $0x18] sm:$0xff]  ;;  %v175_v63 = vsub.s32 0, %v174_v61 }
   0x5   :  { %287 = vmatpush3.bf16.msra.mxu0 %v284_v3  ;;  %304 = vmatpush3.bf16.msra.mxu1 %v284_v3  ;;  %v296_v13 = vpack.c.bf16 %v28_v12, %v27_v11  ;;  %v164_v62 = vld [vmem:[%s431_s2] sm:$0x1] }
   0x6   :  { %289 = vmatprep.subr.bf16.mxu0 %v288_v5  ;;  %301 = vmatprep.subr.bf16.mxu1 %v288_v5  ;;  %v249_v3 = vld [vmem:[%s432_s3] ss:$0 sm:$0xff] }
   0x7   :  { %278 = vmatprep.mubr.msk.f32.mxu0 %vm29_vm0, %v17_v8  ;;  %281 = vmatprep.mubr.msk.f32.mxu1 %vm29_vm0, %v19_v9 }
   0x9   :  { %291 = vmatpush3.bf16.msra.mxu0 %v288_v5  ;;  %305 = vmatpush3.bf16.msra.mxu1 %v288_v5 }
   0xa   :  { %293 = vmatprep.subr.bf16.mxu0 %v292_v10  ;;  %302 = vmatprep.subr.bf16.mxu1 %v292_v10 }
   0xd   :  { %295 = vmatpush3.bf16.msra.mxu0 %v292_v10  ;;  %306 = vmatpush3.bf16.msra.mxu1 %v292_v10 }
   0xe   :  { %297 = vmatprep.subr.bf16.mxu0 %v296_v13  ;;  %303 = vmatprep.subr.bf16.mxu1 %v296_v13 }
  0x11   :  { %299 = vmatpush3.bf16.msra.mxu0 %v296_v13  ;;  %307 = vmatpush3.bf16.msra.mxu1 %v296_v13 }
  0x14   :  { %279 = vmatmul.mubr.msk.f32.vlgmr.msra.gmra.mrb[0].mxu0 %vm29_vm0, %v18_v14  ;;  %282 = vmatmul.mubr.msk.f32.vlgmr.msra.gmra.mrb[0].mxu1 %vm29_vm0, %v20_v15 }
  0xe7   :  { %v280_v16 = vpop.f32.mrb[0].mxu0  ;;  %v283_v17 = vpop.f32.mrb[0].mxu1 }
  0xe8   :  { %v129_v18 = vsel %vm127_vm1, %v280_v16, 0.0  ;;  %v144_v19 = vmul.f32 %v280_v16, %v280_v16  ;;  %v108_v20 = vpop.f32.mrb[1].mxu0  ;;  %v118_v21 = vpop.f32.mrb[1].mxu1  ;;  %v146_v29 = vmul.f32 %v283_v17, %v283_v17  ;;  %v133_v33 = vsel %vm127_vm1, %v283_v17, 0.0 }
  0xe9   :  { %v128_v22 = vsel %vm127_vm1, %v108_v20, 0.0  ;;  %v143_v23 = vmul.f32 %v108_v20, %v108_v20  ;;  %v131_v24 = vsel %vm127_vm1, %v118_v21, 0.0  ;;  %v145_v25 = vmul.f32 %v118_v21, %v118_v21 }
  0xea   :  { %v148_v26 = vsel %vm127_vm1, %v144_v19, 0.0  ;;  %v130_v27 = vadd.f32 %v129_v18, %v128_v22  ;;  %v152_v36 = vsel %vm127_vm1, %v146_v29, 0.0 }
  0xeb   :  { %v147_v28 = vsel %vm127_vm1, %v143_v23, 0.0  ;;  %v150_v30 = vsel %vm127_vm1, %v145_v25, 0.0 }
  0xec   :  { %v149_v31 = vadd.f32 %v148_v26, %v147_v28  ;;  %v132_v32 = vadd.f32 %v131_v24, %v130_v27 }
  0xee   :  { %v134_v34 = vadd.f32 %v133_v33, %v132_v32  ;;  %v151_v35 = vadd.f32 %v150_v30, %v149_v31 }
  0xf0   :  { %v135_v37 = vrot.slane %v134_v34, 4  ;;  %v153_v38 = vadd.f32 %v152_v36, %v151_v35 }
  0xf2   :  { %v136_v39 = vadd.f32 %v135_v37, %v134_v34  ;;  %v154_v40 = vrot.slane %v153_v38, 4 }
  0xf4   :  { %v137_v41 = vrot.slane %v136_v39, 2  ;;  %v155_v42 = vadd.f32 %v154_v40, %v153_v38 }
  0xf6   :  { %v138_v43 = vadd.f32 %v137_v41, %v136_v39  ;;  %v156_v44 = vrot.slane %v155_v42, 2 }
  0xf8   :  { %v139_v45 = vrot.slane %v138_v43, 1  ;;  %v157_v46 = vadd.f32 %v156_v44, %v155_v42 }
  0xfa   :  { %v140_v47 = vadd.f32 %v139_v45, %v138_v43  ;;  %v158_v48 = vrot.slane %v157_v46, 1 }
  0xfc   :  { %v142_v49 = vmul.f32 0.03125, %v140_v47  ;;  %v159_v50 = vadd.f32 %v158_v48, %v157_v46 }
  0xfe   :  { %v160_v51 = vmul.f32 0.03125, %v159_v50  ;;  %v161_v52 = vmul.f32 %v142_v49, %v142_v49  ;;  %v170_v53 = vsub.f32 %v118_v21, %v142_v49  ;;  %v168_v54 = vsub.f32 %v108_v20, %v142_v49 }
  0xff   :  { %v171_v55 = vsub.f32 %v283_v17, %v142_v49  ;;  %v169_v56 = vsub.f32 %v280_v16, %v142_v49 }
 0x100   :  { %v162_v57 = vsub.f32 %v160_v51, %v161_v52 }
 0x102   :  { %v163_v58 = vmax.f32 %v162_v57, 0.0 }
 0x104   :  { %v165_v59 = vadd.f32 1e-05, %v163_v58 }
 0x106   :  { %308 = vrsqrt.f32 %v165_v59 }
 0x110   :  { %v309_v0 = vpop.eup %308 }
 0x111   :  { %v167_v1 = vmul.f32 %v309_v0, %v164_v62 }
 0x113   :  { %v176_v2 = vrot.slane %v167_v1, %v175_v63 }
 0x115   :  { %v180_v4 = vmul.f32 %v176_v2, %v170_v53  ;;  %v178_v5 = vmul.f32 %v176_v2, %v168_v54  ;;  %v181_v6 = vmul.f32 %v176_v2, %v171_v55  ;;  %v179_v7 = vmul.f32 %v176_v2, %v169_v56 }
 0x117   :  { %v191_v8 = vadd.f32 %v249_v3, %v180_v4  ;;  %v189_v9 = vadd.f32 %v249_v3, %v178_v5  ;;  %v192_v12 = vadd.f32 %v249_v3, %v181_v6  ;;  %v190_v13 = vadd.f32 %v249_v3, %v179_v7 }
 0x119   :  { %v199_v10 = vsel %vm127_vm1, %v191_v8, -inf  ;;  %v193_v11 = vsel %vm127_vm1, %v189_v9, -inf  ;;  %v202_v14 = vsel %vm127_vm1, %v192_v12, -inf  ;;  %v196_v15 = vsel %vm127_vm1, %v190_v13, -inf }
 0x11a   :  { %200 = vmax.xlane.f32.xlu1 %v199_v10  ;;  %194 = vmax.xlane.f32.xlu0 %v193_v11 }
 0x11e   :  { %203 = vmax.xlane.f32.xlu1 %v202_v14  ;;  %197 = vmax.xlane.f32.xlu0 %v196_v15 }
 0x1a7   :  { %v201_v16 = vpop.xlane.xlu1 %200  ;;  %v195_v17 = vpop.xlane.xlu0 %194 }
 0x1a8   :  { %v207_v18 = vsub.f32 %v191_v8, %v201_v16  ;;  %v205_v19 = vsub.f32 %v189_v9, %v195_v17 }
 0x1aa   :  { %v209_v20 = vmul.f32 1.442695, %v205_v19  ;;  %v213_v21 = vmul.f32 1.442695, %v207_v18 }
 0x1ab   :  { %v204_v22 = vpop.xlane.xlu1 %203  ;;  %v198_v23 = vpop.xlane.xlu0 %197 }
 0x1ac   :  { %v208_v24 = vsub.f32 %v192_v12, %v204_v22  ;;  %v206_v25 = vsub.f32 %v190_v13, %v198_v23  ;;  %310 = vpow2.f32 %v209_v20 }
 0x1ad   :  { %312 = vpow2.f32 %v213_v21 }
 0x1ae   :  { %v211_v26 = vmul.f32 1.442695, %v206_v25  ;;  %v215_v27 = vmul.f32 1.442695, %v208_v24 }
 0x1b0   :  { %314 = vpow2.f32 %v211_v26 }
 0x1b1   :  { %316 = vpow2.f32 %v215_v27 }
 0x1b6   :  { %v311_v28 = vpop.eup %310 }
 0x1b7   :  { %v217_v29 = vsel %vm127_vm1, %v311_v28, 0.0  ;;  %v313_v30 = vpop.eup %312 }
 0x1b8   :  { %218 = vadd.xlane.f32.xlu0 %v217_v29  ;;  %v223_v32 = vsel %vm127_vm1, %v313_v30, 0.0 }
 0x1ba   :  { %v315_v31 = vpop.eup %314 }
 0x1bb   :  { %v220_v33 = vsel %vm127_vm1, %v315_v31, 0.0  ;;  %v317_v34 = vpop.eup %316 }
 0x1bc   :  { %224 = vadd.xlane.f32.xlu0 %v223_v32  ;;  %221 = vadd.xlane.f32.xlu1 %v220_v33  ;;  %v226_v35 = vsel %vm127_vm1, %v317_v34, 0.0 }
 0x1c0   :  { %227 = vadd.xlane.f32.xlu1 %v226_v35 }
 0x245   :  { %v219_v36 = vpop.xlane.xlu0 %218 }
 0x246   :  { %318 = vrcp.f32 %v219_v36 }
 0x249   :  { %v222_v37 = vpop.xlane.xlu1 %221  ;;  %v225_v38 = vpop.xlane.xlu0 %224 }
 0x24a   :  { %320 = vrcp.f32 %v222_v37 }
 0x24b   :  { %322 = vrcp.f32 %v225_v38 }
 0x24d   :  { %v228_v39 = vpop.xlane.xlu1 %227 }
 0x24e   :  { %324 = vrcp.f32 %v228_v39 }
 0x250   :  { %v319_v40 = vpop.eup %318 }
 0x251   :  { %v230_v41 = vmul.f32 %v319_v40, %v311_v28 }
 0x253   :  { %237 = vst.msk [vmem:[%s433_s4] sm:$0xff] %vm127_vm1, %v230_v41 }
 0x254   :  { %v321_v42 = vpop.eup %320 }
 0x255   :  { %v323_v43 = vpop.eup %322  ;;  %v232_v44 = vmul.f32 %v321_v42, %v315_v31 }
 0x256   :  { %v234_v45 = vmul.f32 %v323_v43, %v313_v30 }
 0x257   :  { %238 = vst.msk [vmem:[%s433_s4 + $0x8] sm:$0xff] %vm127_vm1, %v232_v44 }
 0x258   :  { %v325_v46 = vpop.eup %324  ;;  %239 = vst.msk [vmem:[%s433_s4 + $0x10] sm:$0xff] %vm127_vm1, %v234_v45 }
 0x259   :  { %v236_v47 = vmul.f32 %v325_v46, %v317_v34 }
 0x25b   :  { %240 = vst.msk [vmem:[%s433_s4 + $0x18] sm:$0xff] %vm127_vm1, %v236_v47 }

// kernel: netvlad_loupe_forward.6
= control target key start
LH: loop header
LB: loop body
LE: loop exit
PB: predicated region body
PF: predicated region fallthrough
CT: control target
= control target key end

     0   :  { %7 = vsyncpa [#allocation3], 0  ;;  %s1343_s0 = inlined_call_operand.vmem [shape: f32[2,1024], index: 0, kind: input, shape index: {}]   ;;  %s1344_s1 = inlined_call_operand.hbm [shape: f32[1024,256], index: 1, kind: input, shape index: {}]   ;;  %s1345_s2 = inlined_call_operand.vmem [shape: f32[2,256], index: 2, kind: output, shape index: {}]  }
   0x1   :  { %9 = vsyncpa [#allocation3 + $0x1], 0  ;;  %s1090_s9 = smov 0   ;;  %s1092_s10 = smov 0  }
   0x2   :  { %s1094_s11 = smov 0   ;;  %s1096_s12 = smov 0  }
   0x3 LB: > { %s1109_s13 = sadd.s32 4294967295, %s1068_s12   ;;  %s1112_s14 = sadd.s32 1, %s1068_s12   ;;  %s1068_s12 = sphi %s1096_s12, %s1351_s12   ;;  %s1064_s11 = sphi %s1094_s11, %s1350_s11   ;;  %s1060_s10 = sphi %s1092_s10, %s1349_s10   ;;  %s1056_s9 = sphi %s1090_s9, %s1348_s9  }
   0x4   : > { %s40_s15 = ssub.s32 %s1068_s12, %s1112_s14  ;;  %s43_s16 = sadd.s32 1, %s1064_s11 }
   0x5   : > { %p41_p0 = scmp.eq.s32.totalorder %s40_s15, 0  ;;  %p50_p1 = scmp.ne.s32.totalorder %s1064_s11, %s1060_s10 }
   0x6   : > { %p51_p2 = scmp.eq.s32.totalorder %s1068_s12, 0  ;;  %p56_p3 = scmp.ne.s32.totalorder %s1060_s10, %s1056_s9 }
   0x7   : > { %s1122_s17 = scalar_select %p41_p0, %s1064_s11, %s43_s16  }
   0x8   : > { %p52_p4 = por %p51_p2, %p50_p1  ;;  %p57_p5 = scmp.eq.s32.totalorder %s1109_s13, 0 }
   0x9   : > { %p965_p6 = scmp.lt.s32.totalorder %s1068_s12, 2  ;;  %s109_s19 = sand.u32 1, %s1064_s11  }
   0xa   : > { %p1126_p7 = por %p57_p5, %p56_p3  ;;  %s684_s20 = sshll.u32 %s109_s19, 10 }
   0xb   : > { %s685_s21 = sshll.u32 %s1068_s12, 7  ;;  %s113_s25 = scalar_lea.vmem [#allocation2], %s684_s20 }
   0xc   : > { %s1135_s24 = scalar_lea.hbm %s1344_s1, %s685_s21  ;;  %s119_s26 = sshll.u32 %s113_s25, 4  ;;  %s1137_s26 = int_to_ptr.vmem [resolvable:$true] %s119_s26 }
   0xd   : > { %p1139_p8 = pnand %p965_p6, %p52_p4  ;;  %s1143_s28 = scalar_lea.sflag [#allocation3], %s109_s19 }
   0xe   : > { %s1004_s29 = scalar_lea.hbm %s1135_s24, 16384  ;;  %s1009_s4 = scalar_lea.hbm %s1344_s1, 32768 }
   0xf   : > { %p1005_p9 = scmp.ne.s32.totalorder %s1135_s24, %s1004_s29  ;;  %p1006_p10 = pneg %p1139_p8 }
  0x10   : > { %p1010_p13 = scmp.lt.u32.totalorder %s1135_s24, %s1344_s1  ;;  %p1011_p0 = scmp.lt.u32.totalorder %s1009_s4, %s1004_s29 }
  0x11   : > { %p1007_p11 = pnand %p1006_p10, %p1005_p9  ;;  %p1013_p2 = scmp.lt.u32.totalorder %s1004_s29, %s1135_s24 }
  0x12   : > { %p1012_p1 = por %p1011_p0, %p1010_p13 }
  0x13   : > { %p1008_p12 = pneg %p1007_p11 }
  0x14   : > { %p1014_p3 = por %p1013_p2, %p1012_p1 }
  0x16   : > { %p1015_p4 = pnand %p1014_p3, %p1008_p12 }
  0x18   : > { %1018 = shalt.err (!%p1015_p4)
}
  0x19   : > { %s1019_s7 = scalar_lea.vmem %s1137_s26, 16384  ;;  %s1070_s8 = smov [#allocation2]  }
  0x1a   : > { %p1020_p5 = scmp.ne.s32.totalorder %s1137_s26, %s1019_s7  ;;  %s1024_s9 = sshll.u32 %s1070_s8, 4  ;;  %s1025_s9 = int_to_ptr.vmem [resolvable:$false] %s1024_s9 }
  0x1b   : > { %s1026_s15 = scalar_lea.vmem %s1025_s9, 32768  ;;  %p1027_p11 = scmp.lt.s32.totalorder %s1137_s26, %s1025_s9 }
  0x1c   : > { %p1022_p6 = pnand %p1020_p5, %p1006_p10  ;;  %p1028_p13 = scmp.lt.s32.totalorder %s1026_s15, %s1019_s7 }
  0x1e   : > { %p1023_p9 = pneg %p1022_p6  ;;  %p1029_p0 = por %p1028_p13, %p1027_p11 }
  0x20   : > { %p1030_p1 = pnand %p1029_p0, %p1023_p9 }
  0x22   : > { %1033 = shalt.err (!%p1030_p1)
}
  0x23   : > { %s1071_s16 = smov 256   ;;  %s1072_s19 = smov 128  }
  0x24   : > { %s1073_s20 = smov 8   ;;  %p686_p10 = scmp.ge.s32.totalorder %s1068_s12, 1 }
  0x25   : > { %964 = dma.hbm_to_vmem [thread:$0]  (!%p1139_p8), %s1135_s24, 16384, %s1137_s26, %s1143_s28, %s1071_s16, %s1072_s19, %s1073_s20  }
  0x26   : > { %p127_p12 = scmp.lt.s32.totalorder %s1068_s12, 3 }
  0x28   : > { %p128_p2 = pnand %p686_p10, %p127_p12 }
  0x29   : > { %s133_s21 = sand.u32 (!%p128_p2), 1, %s1060_s10  }
  0x2a   : > { %131 = sbr.rel (%p128_p2) target bundleno = 338 (0x152), region = 28  ;;  %s687_s22 = sshll.u32 (!%p128_p2), %s133_s21, 10 }
  0x2b   : > { %s134_s23 = scalar_lea.sflag (!%p128_p2), [#allocation3], %s133_s21  ;;  %s1174_s25 = scalar_lea.vmem (!%p128_p2), [#allocation2], %s687_s22 }
  0x31   : > { %1051 = dma.done.wait (%p1126_p7), %s134_s23, 16384  }
  0x32   : > { %1053 = vsyncadd (%p1126_p7), %s134_s23, 4294950912  ;;  %v179_v0 = vld [vmem:[%s1174_s25 + $0x80] sm:$0xff]  ;;  %v180_v1 = vld [vmem:[%s1174_s25 + $0x88] sm:$0xff]  ;;  %v1074_v47 = vmov 1983009808   ;;  %v297_v49 = vlaneseq  ;;  %p157_p7 = scmp.lt.s32.totalorder %s1109_s13, 1 }
  0x33   : > { %v211_v2 = vld [vmem:[%s1174_s25 + $0x180] sm:$0xff]  ;;  %v831_v3 = vpack.c.bf16 %v180_v1, %v179_v0  ;;  %v212_v4 = vld [vmem:[%s1174_s25 + $0x188] sm:$0xff]  ;;  %v181_v11 = vld [vmem:[%s1174_s25 + $0x90] sm:$0xff]  ;;  %v295_v48 = vunpack.c.l.s4 %v1074_v47 }
  0x34   : > { %v163_v5 = vld [vmem:[%s1174_s25] sm:$0xff]  ;;  %v164_v6 = vld [vmem:[%s1174_s25 + $0x8] sm:$0xff]  ;;  %v863_v7 = vpack.c.bf16 %v212_v4, %v211_v2  ;;  %v182_v13 = vld [vmem:[%s1174_s25 + $0x98] sm:$0xff]  ;;  %v298_v0 = vshrl.u32 %v297_v49, 7  ;;  %s1353_s13 = smov (!%p157_p7, %s1109_s13), 1 }
  0x35   : > { %v833_v8 = vpack.c.bf16 %v164_v6, %v163_v5  ;;  %v195_v9 = vld [vmem:[%s1174_s25 + $0x100] sm:$0xff]  ;;  %v196_v10 = vld [vmem:[%s1174_s25 + $0x108] sm:$0xff]  ;;  %832 = vmatprep.subr.bf16.mxu0 %v831_v3  ;;  %v213_v14 = vld [vmem:[%s1174_s25 + $0x190] sm:$0xff]  ;;  %v835_v16 = vpack.c.bf16 %v182_v13, %v181_v11  ;;  %v296_v63 = vunpack.c.0.s8 %v295_v48  ;;  %s688_s27 = sshll.u32 %s1353_s13, 1 }
  0x36   : > { %v865_v12 = vpack.c.bf16 %v196_v10, %v195_v9  ;;  %v214_v15 = vld [vmem:[%s1174_s25 + $0x198] sm:$0xff]  ;;  %864 = vmatprep.subr.bf16.mxu1 %v863_v7  ;;  %v165_v18 = vld [vmem:[%s1174_s25 + $0x10] sm:$0xff]  ;;  %v183_v23 = vld [vmem:[%s1174_s25 + $0xa0] sm:$0xff]  ;;  %s160_s30 = scalar_lea.vmem %s1345_s2, %s688_s27 }
  0x37   : > { %834 = vmatpush3.bf16.msra.mxu0 %v833_v8  ;;  %v867_v17 = vpack.c.bf16 %v214_v15, %v213_v14  ;;  %v166_v19 = vld [vmem:[%s1174_s25 + $0x18] sm:$0xff]  ;;  %v197_v20 = vld [vmem:[%s1174_s25 + $0x110] sm:$0xff]  ;;  %v184_v24 = vld [vmem:[%s1174_s25 + $0xa8] sm:$0xff]  ;;  %v1230_v13 = vsub.s32 %v296_v63, %v298_v0 }
  0x38   : > { %866 = vmatpush3.bf16.msra.mxu1 %v865_v12  ;;  %v837_v21 = vpack.c.bf16 %v166_v19, %v165_v18  ;;  %v198_v22 = vld [vmem:[%s1174_s25 + $0x118] sm:$0xff]  ;;  %836 = vmatprep.subr.bf16.mxu0 %v835_v16  ;;  %v839_v26 = vpack.c.bf16 %v184_v24, %v183_v23  ;;  %v215_v27 = vld [vmem:[%s1174_s25 + $0x1a0] sm:$0xff]  ;;  %v216_v28 = vld [vmem:[%s1174_s25 + $0x1a8] sm:$0xff] }
  0x39   : > { %868 = vmatprep.subr.bf16.mxu1 %v867_v17  ;;  %v869_v25 = vpack.c.bf16 %v198_v22, %v197_v20  ;;  %v167_v29 = vld [vmem:[%s1174_s25 + $0x20] sm:$0xff]  ;;  %v871_v30 = vpack.c.bf16 %v216_v28, %v215_v27  ;;  %v168_v31 = vld [vmem:[%s1174_s25 + $0x28] sm:$0xff]  ;;  %v185_v35 = vld [vmem:[%s1174_s25 + $0xb0] sm:$0xff] }
  0x3a   : > { %v199_v32 = vld [vmem:[%s1174_s25 + $0x120] sm:$0xff]  ;;  %v200_v33 = vld [vmem:[%s1174_s25 + $0x128] sm:$0xff]  ;;  %v841_v34 = vpack.c.bf16 %v168_v31, %v167_v29  ;;  %v186_v36 = vld [vmem:[%s1174_s25 + $0xb8] sm:$0xff] }
  0x3b   : > { %838 = vmatpush3.bf16.msra.mxu0 %v837_v21  ;;  %v217_v37 = vld [vmem:[%s1174_s25 + $0x1b0] sm:$0xff]  ;;  %v873_v38 = vpack.c.bf16 %v200_v33, %v199_v32  ;;  %v843_v39 = vpack.c.bf16 %v186_v36, %v185_v35  ;;  %v218_v40 = vld [vmem:[%s1174_s25 + $0x1b8] sm:$0xff]  ;;  %v187_v46 = vld [vmem:[%s1174_s25 + $0xc0] sm:$0xff] }
  0x3c   : > { %870 = vmatpush3.bf16.msra.mxu1 %v869_v25  ;;  %840 = vmatprep.subr.bf16.mxu0 %v839_v26  ;;  %v169_v41 = vld [vmem:[%s1174_s25 + $0x30] sm:$0xff]  ;;  %v170_v42 = vld [vmem:[%s1174_s25 + $0x38] sm:$0xff]  ;;  %v875_v43 = vpack.c.bf16 %v218_v40, %v217_v37  ;;  %v188_v50 = vld [vmem:[%s1174_s25 + $0xc8] sm:$0xff] }
  0x3d   : > { %872 = vmatprep.subr.bf16.mxu1 %v871_v30  ;;  %v201_v44 = vld [vmem:[%s1174_s25 + $0x130] sm:$0xff]  ;;  %v202_v45 = vld [vmem:[%s1174_s25 + $0x138] sm:$0xff]  ;;  %v219_v51 = vld [vmem:[%s1174_s25 + $0x1c0] sm:$0xff]  ;;  %v845_v53 = vpack.c.bf16 %v170_v42, %v169_v41  ;;  %v847_v55 = vpack.c.bf16 %v188_v50, %v187_v46 }
  0x3e   : > { %v220_v52 = vld [vmem:[%s1174_s25 + $0x1c8] sm:$0xff]  ;;  %v877_v54 = vpack.c.bf16 %v202_v45, %v201_v44  ;;  %v171_v56 = vld [vmem:[%s1174_s25 + $0x40] sm:$0xff]  ;;  %v189_v61 = vld [vmem:[%s1174_s25 + $0xd0] sm:$0xff] }
  0x3f   : > { %842 = vmatpush3.bf16.msra.mxu0 %v841_v34  ;;  %v172_v57 = vld [vmem:[%s1174_s25 + $0x48] sm:$0xff]  ;;  %v203_v58 = vld [vmem:[%s1174_s25 + $0x140] sm:$0xff]  ;;  %v879_v59 = vpack.c.bf16 %v220_v52, %v219_v51  ;;  %v190_v62 = vld [vmem:[%s1174_s25 + $0xd8] sm:$0xff] }
  0x40   : > { %874 = vmatpush3.bf16.msra.mxu1 %v873_v38  ;;  %844 = vmatprep.subr.bf16.mxu0 %v843_v39  ;;  %v204_v60 = vld [vmem:[%s1174_s25 + $0x148] sm:$0xff]  ;;  %v221_v1 = vld [vmem:[%s1174_s25 + $0x1d0] sm:$0xff]  ;;  %v222_v2 = vld [vmem:[%s1174_s25 + $0x1d8] sm:$0xff]  ;;  %v849_v3 = vpack.c.bf16 %v172_v57, %v171_v56  ;;  %v851_v5 = vpack.c.bf16 %v190_v62, %v189_v61 }
  0x41   : > { %876 = vmatprep.subr.bf16.mxu1 %v875_v43  ;;  %v881_v4 = vpack.c.bf16 %v204_v60, %v203_v58  ;;  %v173_v6 = vld [vmem:[%s1174_s25 + $0x50] sm:$0xff]  ;;  %v174_v7 = vld [vmem:[%s1174_s25 + $0x58] sm:$0xff]  ;;  %v883_v9 = vpack.c.bf16 %v222_v2, %v221_v1  ;;  %v191_v11 = vld [vmem:[%s1174_s25 + $0xe0] sm:$0xff] }
  0x42   : > { %v205_v8 = vld [vmem:[%s1174_s25 + $0x150] sm:$0xff]  ;;  %v206_v10 = vld [vmem:[%s1174_s25 + $0x158] sm:$0xff]  ;;  %v192_v12 = vld [vmem:[%s1174_s25 + $0xe8] sm:$0xff]  ;;  %v853_v16 = vpack.c.bf16 %v174_v7, %v173_v6 }
  0x43   : > { %846 = vmatpush3.bf16.msra.mxu0 %v845_v53  ;;  %v223_v14 = vld [vmem:[%s1174_s25 + $0x1e0] sm:$0xff]  ;;  %v224_v15 = vld [vmem:[%s1174_s25 + $0x1e8] sm:$0xff]  ;;  %v885_v18 = vpack.c.bf16 %v206_v10, %v205_v8  ;;  %v855_v19 = vpack.c.bf16 %v192_v12, %v191_v11  ;;  %v193_v25 = vld [vmem:[%s1174_s25 + $0xf0] sm:$0xff] }
  0x44   : > { %878 = vmatpush3.bf16.msra.mxu1 %v877_v54  ;;  %848 = vmatprep.subr.bf16.mxu0 %v847_v55  ;;  %v175_v17 = vld [vmem:[%s1174_s25 + $0x60] sm:$0xff]  ;;  %v176_v20 = vld [vmem:[%s1174_s25 + $0x68] sm:$0xff]  ;;  %v887_v23 = vpack.c.bf16 %v224_v15, %v223_v14  ;;  %v194_v26 = vld [vmem:[%s1174_s25 + $0xf8] sm:$0xff] }
  0x45   : > { %880 = vmatprep.subr.bf16.mxu1 %v879_v59  ;;  %v207_v21 = vld [vmem:[%s1174_s25 + $0x160] sm:$0xff]  ;;  %v208_v24 = vld [vmem:[%s1174_s25 + $0x168] sm:$0xff]  ;;  %v225_v29 = vld [vmem:[%s1174_s25 + $0x1f0] sm:$0xff]  ;;  %v857_v31 = vpack.c.bf16 %v176_v20, %v175_v17  ;;  %v859_v35 = vpack.c.bf16 %v194_v26, %v193_v25 }
  0x46   : > { %v161_v22 = vld [vmem:[%s1343_s0] sm:$0xff]  ;;  %v226_v30 = vld [vmem:[%s1174_s25 + $0x1f8] sm:$0xff]  ;;  %v889_v34 = vpack.c.bf16 %v208_v24, %v207_v21  ;;  %v177_v36 = vld [vmem:[%s1174_s25 + $0x70] sm:$0xff] }
  0x47   : > { %850 = vmatpush3.bf16.msra.mxu0 %v849_v3  ;;  %v300_v27 = vrot.slane %v161_v22, %v1230_v13  ;;  %v293_v28 = vcombine.high %v161_v22, %v161_v22  ;;  %v178_v37 = vld [vmem:[%s1174_s25 + $0x78] sm:$0xff]  ;;  %v209_v38 = vld [vmem:[%s1174_s25 + $0x170] sm:$0xff]  ;;  %v891_v39 = vpack.c.bf16 %v226_v30, %v225_v29  ;;  %v243_v42 = vld [vmem:[%s1174_s25 + $0x280] sm:$0xff] }
  0x48   : > { %882 = vmatpush3.bf16.msra.mxu1 %v881_v4  ;;  %852 = vmatprep.subr.bf16.mxu0 %v851_v5  ;;  %v210_v40 = vld [vmem:[%s1174_s25 + $0x178] sm:$0xff]  ;;  %v244_v43 = vld [vmem:[%s1174_s25 + $0x288] sm:$0xff]  ;;  %v275_v44 = vld [vmem:[%s1174_s25 + $0x380] sm:$0xff]  ;;  %v861_v46 = vpack.c.bf16 %v178_v37, %v177_v36 }
  0x49   : > { %884 = vmatprep.subr.bf16.mxu1 %v883_v9  ;;  %v308_v32 = vcombine.high %v300_v27, %v300_v27  ;;  %v307_v33 = vrot.slane %v293_v28, %v1230_v13  ;;  %v276_v45 = vld [vmem:[%s1174_s25 + $0x388] sm:$0xff]  ;;  %v893_v47 = vpack.c.bf16 %v210_v40, %v209_v38  ;;  %v895_v48 = vpack.c.bf16 %v244_v43, %v243_v42  ;;  %v227_v49 = vld [vmem:[%s1174_s25 + $0x200] sm:$0xff]  ;;  %v245_v54 = vld [vmem:[%s1174_s25 + $0x290] sm:$0xff] }
  0x4a   : > { %v228_v50 = vld [vmem:[%s1174_s25 + $0x208] sm:$0xff]  ;;  %v259_v51 = vld [vmem:[%s1174_s25 + $0x300] sm:$0xff]  ;;  %v927_v52 = vpack.c.bf16 %v276_v45, %v275_v44  ;;  %v246_v55 = vld [vmem:[%s1174_s25 + $0x298] sm:$0xff] }
  0x4b   : > { %854 = vmatpush3.bf16.msra.mxu0 %v853_v16  ;;  %399 = vmatprep.mubr.f32.mxu0 %v308_v32  ;;  %v309_v41 = vcombine.high %v307_v33, %v307_v33  ;;  %v260_v53 = vld [vmem:[%s1174_s25 + $0x308] sm:$0xff]  ;;  %v277_v56 = vld [vmem:[%s1174_s25 + $0x390] sm:$0xff]  ;;  %v278_v57 = vld [vmem:[%s1174_s25 + $0x398] sm:$0xff]  ;;  %v897_v58 = vpack.c.bf16 %v228_v50, %v227_v49  ;;  %v899_v60 = vpack.c.bf16 %v246_v55, %v245_v54 }
  0x4c   : > { %886 = vmatpush3.bf16.msra.mxu1 %v885_v18  ;;  %856 = vmatprep.subr.bf16.mxu0 %v855_v19  ;;  %v929_v59 = vpack.c.bf16 %v260_v53, %v259_v51  ;;  %v229_v61 = vld [vmem:[%s1174_s25 + $0x210] sm:$0xff]  ;;  %v230_v62 = vld [vmem:[%s1174_s25 + $0x218] sm:$0xff]  ;;  %v931_v0 = vpack.c.bf16 %v278_v57, %v277_v56  ;;  %v247_v2 = vld [vmem:[%s1174_s25 + $0x2a0] sm:$0xff] }
  0x4d   : > { %888 = vmatprep.subr.bf16.mxu1 %v887_v23  ;;  %469 = vmatprep.mubr.f32.mxu1 %v309_v41  ;;  %v261_v63 = vld [vmem:[%s1174_s25 + $0x310] sm:$0xff]  ;;  %v262_v1 = vld [vmem:[%s1174_s25 + $0x318] sm:$0xff]  ;;  %v248_v3 = vld [vmem:[%s1174_s25 + $0x2a8] sm:$0xff]  ;;  %v901_v6 = vpack.c.bf16 %v230_v62, %v229_v61 }
  0x4e   : > { %v279_v4 = vld [vmem:[%s1174_s25 + $0x3a0] sm:$0xff]  ;;  %v280_v5 = vld [vmem:[%s1174_s25 + $0x3a8] sm:$0xff]  ;;  %v933_v7 = vpack.c.bf16 %v262_v1, %v261_v63  ;;  %v903_v8 = vpack.c.bf16 %v248_v3, %v247_v2  ;;  %v249_v15 = vld [vmem:[%s1174_s25 + $0x2b0] sm:$0xff] }
  0x4f   : > { %858 = vmatpush3.bf16.msra.mxu0 %v857_v31  ;;  %v231_v9 = vld [vmem:[%s1174_s25 + $0x220] sm:$0xff]  ;;  %v232_v10 = vld [vmem:[%s1174_s25 + $0x228] sm:$0xff]  ;;  %v935_v12 = vpack.c.bf16 %v280_v5, %v279_v4  ;;  %v250_v16 = vld [vmem:[%s1174_s25 + $0x2b8] sm:$0xff] }
  0x50   : > { %890 = vmatpush3.bf16.msra.mxu1 %v889_v34  ;;  %860 = vmatprep.subr.bf16.mxu0 %v859_v35  ;;  %v263_v11 = vld [vmem:[%s1174_s25 + $0x320] sm:$0xff]  ;;  %v264_v14 = vld [vmem:[%s1174_s25 + $0x328] sm:$0xff]  ;;  %v281_v17 = vld [vmem:[%s1174_s25 + $0x3b0] sm:$0xff]  ;;  %v905_v19 = vpack.c.bf16 %v232_v10, %v231_v9  ;;  %v907_v21 = vpack.c.bf16 %v250_v16, %v249_v15 }
  0x51   : > { %892 = vmatprep.subr.bf16.mxu1 %v891_v39  ;;  %v282_v18 = vld [vmem:[%s1174_s25 + $0x3b8] sm:$0xff]  ;;  %v937_v20 = vpack.c.bf16 %v264_v14, %v263_v11  ;;  %v233_v22 = vld [vmem:[%s1174_s25 + $0x230] sm:$0xff]  ;;  %v252_v28 = vld [vmem:[%s1174_s25 + $0x2c8] sm:$0xff] }
  0x52   : > { %v234_v23 = vld [vmem:[%s1174_s25 + $0x238] sm:$0xff]  ;;  %v265_v24 = vld [vmem:[%s1174_s25 + $0x330] sm:$0xff]  ;;  %v939_v25 = vpack.c.bf16 %v282_v18, %v281_v17  ;;  %v283_v29 = vld [vmem:[%s1174_s25 + $0x3c0] sm:$0xff] }
  0x53   : > { %862 = vmatpush3.bf16.msra.mxu0 %v861_v46  ;;  %v266_v26 = vld [vmem:[%s1174_s25 + $0x338] sm:$0xff]  ;;  %v284_v30 = vld [vmem:[%s1174_s25 + $0x3c8] sm:$0xff]  ;;  %v909_v32 = vpack.c.bf16 %v234_v23, %v233_v22  ;;  %v235_v37 = vld [vmem:[%s1174_s25 + $0x240] sm:$0xff] }
  0x54   : > { %894 = vmatpush3.bf16.msra.mxu1 %v893_v47  ;;  %896 = vmatprep.subr.bf16.mxu0 %v895_v48  ;;  %v162_v31 = vld [vmem:[%s1343_s0 + $0x8] sm:$0xff]  ;;  %v941_v35 = vpack.c.bf16 %v266_v26, %v265_v24  ;;  %v267_v39 = vld [vmem:[%s1174_s25 + $0x340] sm:$0xff]  ;;  %v943_v40 = vpack.c.bf16 %v284_v30, %v283_v29  ;;  %v253_v42 = vld [vmem:[%s1174_s25 + $0x2d0] sm:$0xff] }
  0x55   : > { %928 = vmatprep.subr.bf16.mxu1 %v927_v52  ;;  %v310_v34 = vcombine.high %v162_v31, %v162_v31  ;;  %v236_v38 = vld [vmem:[%s1174_s25 + $0x248] sm:$0xff]  ;;  %v254_v43 = vld [vmem:[%s1174_s25 + $0x2d8] sm:$0xff]  ;;  %v285_v46 = vld [vmem:[%s1174_s25 + $0x3d0] sm:$0xff] }
  0x56   : > { %400 = vmatmul.mubr.f32.vlgmr.msra.gmra.mrb[0].mxu0 %v300_v27  ;;  %v251_v27 = vld [vmem:[%s1174_s25 + $0x2c0] sm:$0xff]  ;;  %v268_v41 = vld [vmem:[%s1174_s25 + $0x348] sm:$0xff]  ;;  %v286_v47 = vld [vmem:[%s1174_s25 + $0x3d8] sm:$0xff]  ;;  %v913_v48 = vpack.c.bf16 %v236_v38, %v235_v37  ;;  %v915_v51 = vpack.c.bf16 %v254_v43, %v253_v42 }
  0x57   : > { %470 = vmatmul.mubr.f32.vlgmr.msra.gmra.mrb[0].mxu1 %v307_v33  ;;  %898 = vmatpush3.bf16.msra.mxu0 %v897_v58  ;;  %v1291_v33 = vrot.slane %v162_v31, %v1230_v13  ;;  %v911_v36 = vpack.c.bf16 %v252_v28, %v251_v27  ;;  %v324_v45 = vrot.slane %v310_v34, %v1230_v13  ;;  %v237_v52 = vld [vmem:[%s1174_s25 + $0x250] sm:$0xff]  ;;  %v238_v53 = vld [vmem:[%s1174_s25 + $0x258] sm:$0xff]  ;;  %v255_v56 = vld [vmem:[%s1174_s25 + $0x2e0] sm:$0xff] }
  0x58   : > { %930 = vmatpush3.bf16.msra.mxu1 %v929_v59  ;;  %900 = vmatprep.subr.bf16.mxu0 %v899_v60  ;;  %v945_v50 = vpack.c.bf16 %v268_v41, %v267_v39  ;;  %v269_v54 = vld [vmem:[%s1174_s25 + $0x350] sm:$0xff]  ;;  %v947_v13 = vpack.c.bf16 %v286_v47, %v285_v46  ;;  %v270_v55 = vld [vmem:[%s1174_s25 + $0x358] sm:$0xff]  ;;  %v256_v57 = vld [vmem:[%s1174_s25 + $0x2e8] sm:$0xff]  ;;  %v917_v60 = vpack.c.bf16 %v238_v53, %v237_v52 }
  0x59   : > { %932 = vmatprep.subr.bf16.mxu1 %v931_v0  ;;  %v325_v44 = vcombine.high %v1291_v33, %v1291_v33  ;;  %v326_v49 = vcombine.high %v324_v45, %v324_v45  ;;  %v287_v58 = vld [vmem:[%s1174_s25 + $0x3e0] sm:$0xff]  ;;  %v288_v59 = vld [vmem:[%s1174_s25 + $0x3e8] sm:$0xff]  ;;  %v949_v61 = vpack.c.bf16 %v270_v55, %v269_v54  ;;  %v919_v62 = vpack.c.bf16 %v256_v57, %v255_v56  ;;  %v257_v4 = vld [vmem:[%s1174_s25 + $0x2f0] sm:$0xff] }
  0x5a   : > { %v239_v63 = vld [vmem:[%s1174_s25 + $0x260] sm:$0xff]  ;;  %v240_v0 = vld [vmem:[%s1174_s25 + $0x268] sm:$0xff]  ;;  %v951_v2 = vpack.c.bf16 %v288_v59, %v287_v58  ;;  %v258_v5 = vld [vmem:[%s1174_s25 + $0x2f8] sm:$0xff] }
  0x5b   : > { %902 = vmatpush3.bf16.msra.mxu0 %v901_v6  ;;  %539 = vmatprep.mubr.f32.mxu0 %v325_v44  ;;  %v271_v1 = vld [vmem:[%s1174_s25 + $0x360] sm:$0xff]  ;;  %v272_v3 = vld [vmem:[%s1174_s25 + $0x368] sm:$0xff]  ;;  %v289_v6 = vld [vmem:[%s1174_s25 + $0x3f0] sm:$0xff]  ;;  %v923_v10 = vpack.c.bf16 %v258_v5, %v257_v4 }
  0x5c   : > { %934 = vmatpush3.bf16.msra.mxu1 %v933_v7  ;;  %904 = vmatprep.subr.bf16.mxu0 %v903_v8  ;;  %v290_v7 = vld [vmem:[%s1174_s25 + $0x3f8] sm:$0xff]  ;;  %v921_v8 = vpack.c.bf16 %v240_v0, %v239_v63  ;;  %v953_v9 = vpack.c.bf16 %v272_v3, %v271_v1  ;;  %v241_v11 = vld [vmem:[%s1174_s25 + $0x270] sm:$0xff] }
  0x5d   : > { %936 = vmatprep.subr.bf16.mxu1 %v935_v12  ;;  %609 = vmatprep.mubr.f32.mxu1 %v326_v49  ;;  %v242_v12 = vld [vmem:[%s1174_s25 + $0x278] sm:$0xff]  ;;  %v955_v14 = vpack.c.bf16 %v290_v7, %v289_v6  ;;  %v273_v15 = vld [vmem:[%s1174_s25 + $0x370] sm:$0xff] }
  0x5e   : > { %v274_v16 = vld [vmem:[%s1174_s25 + $0x378] sm:$0xff]  ;;  %v925_v17 = vpack.c.bf16 %v242_v12, %v241_v11 }
  0x5f   : > { %906 = vmatpush3.bf16.msra.mxu0 %v905_v19  ;;  %v957_v18 = vpack.c.bf16 %v274_v16, %v273_v15 }
  0x60   : > { %938 = vmatpush3.bf16.msra.mxu1 %v937_v20  ;;  %908 = vmatprep.subr.bf16.mxu0 %v907_v21 }
  0x61   : > { %940 = vmatprep.subr.bf16.mxu1 %v939_v25 }
  0x63   : > { %910 = vmatpush3.bf16.msra.mxu0 %v909_v32 }
  0x64   : > { %942 = vmatpush3.bf16.msra.mxu1 %v941_v35  ;;  %912 = vmatprep.subr.bf16.mxu0 %v911_v36 }
  0x65   : > { %944 = vmatprep.subr.bf16.mxu1 %v943_v40 }
  0x67   : > { %914 = vmatpush3.bf16.msra.mxu0 %v913_v48 }
  0x68   : > { %946 = vmatpush3.bf16.msra.mxu1 %v945_v50  ;;  %916 = vmatprep.subr.bf16.mxu0 %v915_v51 }
  0x69   : > { %948 = vmatprep.subr.bf16.mxu1 %v947_v13 }
  0x6b   : > { %918 = vmatpush3.bf16.msra.mxu0 %v917_v60 }
  0x6c   : > { %950 = vmatpush3.bf16.msra.mxu1 %v949_v61  ;;  %920 = vmatprep.subr.bf16.mxu0 %v919_v62 }
  0x6d   : > { %952 = vmatprep.subr.bf16.mxu1 %v951_v2 }
  0x6f   : > { %922 = vmatpush3.bf16.msra.mxu0 %v921_v8 }
  0x70   : > { %954 = vmatpush3.bf16.msra.mxu1 %v953_v9  ;;  %924 = vmatprep.subr.bf16.mxu0 %v923_v10 }
  0x71   : > { %956 = vmatprep.subr.bf16.mxu1 %v955_v14 }
  0x73   : > { %926 = vmatpush3.bf16.msra.mxu0 %v925_v17 }
  0x74   : > { %958 = vmatpush3.bf16.msra.mxu1 %v957_v18 }
  0x76   : > { %540 = vmatmul.mubr.f32.vlgmr.msra.gmra.mrb[2].mxu0 %v1291_v33 }
  0x77   : > { %610 = vmatmul.mubr.f32.vlgmr.msra.gmra.mrb[2].mxu1 %v324_v45 }
 0x129   : > { %v723_v19 = vpop.f32.mrb[0].mxu0 }
 0x12a   : > { %v758_v20 = vpop.f32.mrb[0].mxu1  ;;  %v724_v21 = vpop.f32.mrb[1].mxu0 }
 0x12b   : > { %v725_v22 = vadd.f32 %v724_v21, %v723_v19  ;;  %v759_v23 = vpop.f32.mrb[1].mxu1 }
 0x12c   : > { %v760_v24 = vadd.f32 %v759_v23, %v758_v20 }
 0x12e   : > { %v472_v25 = vadd.f32 %v760_v24, %v725_v22 }
 0x149   : > { %v793_v26 = vpop.f32.mrb[2].mxu0 }
 0x14a   : > { %v794_v27 = vpop.f32.mrb[3].mxu0  ;;  %v828_v28 = vpop.f32.mrb[2].mxu1 }
 0x14b   : > { %v795_v29 = vadd.f32 %v794_v27, %v793_v26  ;;  %v829_v30 = vpop.f32.mrb[3].mxu1 }
 0x14c   : > { %v830_v31 = vadd.f32 %v829_v30, %v828_v28 }
 0x14d   : > { %v542_v32 = vadd.f32 %v795_v29, %v472_v25 }
 0x14f   : > { %v612_v33 = vadd.f32 %v830_v31, %v542_v32 }
 0x151   : > { %615 = vst [vmem:[%s160_s30] sm:$0x3] %v612_v33 }
 0x152 PF: > { %p12_p8 = scmp.ge.s32.totalorder %s1112_s14, 4   ;;  %s1348_s9 = smov %s1060_s10 }
 0x153   : > { %s1349_s10 = smov %s1064_s11  ;;  %s1350_s11 = smov %s1122_s17 }
 0x154   : > { %s1351_s12 = smov %s1112_s14  ;;  %14 = sbr.rel (!%p12_p8) target bundleno = 3 (0x3), region = 68 }
 0x15b   :  { %635 = vsyncpa [#allocation3], 1 }
 0x15c   :  { %637 = vsyncpa [#allocation3 + $0x1], 1 }

// kernel: netvlad_loupe_forward.7
= control target key start
LH: loop header
LB: loop body
LE: loop exit
PB: predicated region body
PF: predicated region fallthrough
CT: control target
= control target key end

     0   :  { %9 = vsyncpa [#allocation4], 0  ;;  %s1058_s0 = inlined_call_operand.vmem [shape: f32[2,256], index: 0, kind: input, shape index: {}]   ;;  %s1059_s1 = inlined_call_operand.vmem [shape: f32[256,256], index: 1, kind: input, shape index: {}]   ;;  %s1060_s2 = inlined_call_operand.vmem [shape: f32[1,256], index: 2, kind: input, shape index: {}]   ;;  %s1061_s3 = inlined_call_operand.vmem [shape: f32[1,256], index: 3, kind: input, shape index: {}]   ;;  %s1062_s4 = inlined_call_operand.hbm [shape: f32[2,256], index: 4, kind: output, shape index: {}]  }
   0x1   :  { %11 = vsyncpa [#allocation4 + $0x1], 0  ;;  %s828_s15 = smov 0   ;;  %s830_s16 = smov 0  }
   0x2   :  { %s832_s17 = smov 0   ;;  %s834_s18 = smov 0  }
   0x3 LB: > { %s849_s19 = sadd.s32 4294967295, %s800_s18   ;;  %s609_s20 = sadd.s32 4294967294, %s800_s18   ;;  %s800_s18 = sphi %s834_s18, %s1068_s18   ;;  %s796_s17 = sphi %s832_s17, %s1067_s17   ;;  %s792_s16 = sphi %s830_s16, %s1066_s16   ;;  %s788_s15 = sphi %s828_s15, %s1065_s15  }
   0x4   : > { %s853_s21 = sadd.s32 1, %s800_s18   ;;  %s45_s22 = sadd.s32 1, %s796_s17 }
   0x5   : > { %s42_s23 = ssub.s32 %s800_s18, %s853_s21  ;;  %p52_p0 = scmp.ne.s32.totalorder %s796_s17, %s792_s16 }
   0x6   : > { %p43_p1 = scmp.eq.s32.totalorder %s42_s23, 0  ;;  %p53_p2 = scmp.eq.s32.totalorder %s800_s18, 0 }
   0x7   : > { %p124_p3 = scmp.eq.s32.totalorder %s849_s19, 1  ;;  %p129_p4 = scmp.ne.s32.totalorder %s792_s16, %s788_s15 }
   0x8   : > { %s865_s24 = scalar_select %p43_p1, %s796_s17, %s45_s22  }
   0x9   : > { %p54_p5 = por %p53_p2, %p52_p0  ;;  %p867_p6 = por %p124_p3, %p52_p0 }
   0xa   : > { %p130_p7 = scmp.eq.s32.totalorder %s609_s20, 1  ;;  %p611_p9 = scmp.ge.s32.totalorder %s800_s18, 2 }
   0xc   : > { %p871_p8 = por %p130_p7, %p129_p4  ;;  %155 = sbr.rel (%p611_p9) target bundleno = 39 (0x27), region = 28 }
  0x13   : > { %158 = sbr.rel (!%p54_p5) target bundleno = 39 (0x27), region = 32  ;;  %s160_s27 = sand.u32 (%p54_p5), 1, %s796_s17  }
  0x14   : > { %s613_s28 = sshll.u32 (%p54_p5), %s800_s18, 3  ;;  %s612_s29 = sshll.u32 (%p54_p5), %s160_s27, 8 }
  0x15   : > { %s883_s6 = scalar_lea.vmem (%p54_p5), %s1059_s1, %s613_s28  ;;  %s888_s7 = scalar_lea.vmem (%p54_p5), [#allocation2], %s612_s29 }
  0x16   : > { %v254_v0 = vld [vmem:[%s883_s6] sm:$0xff] (%p54_p5)  ;;  %v256_v1 = vld [vmem:[%s883_s6 + $0x10] sm:$0xff] (%p54_p5) }
  0x17   : > { %v258_v2 = vld [vmem:[%s883_s6 + $0x20] sm:$0xff] (%p54_p5)  ;;  %255 = vst [vmem:[%s888_s7] sm:$0xff] (%p54_p5), %v254_v0  ;;  %257 = vst [vmem:[%s888_s7 + $0x8] sm:$0xff] (%p54_p5), %v256_v1  ;;  %v260_v3 = vld [vmem:[%s883_s6 + $0x30] sm:$0xff] (%p54_p5) }
  0x18   : > { %259 = vst [vmem:[%s888_s7 + $0x10] sm:$0xff] (%p54_p5), %v258_v2  ;;  %v262_v4 = vld [vmem:[%s883_s6 + $0x40] sm:$0xff] (%p54_p5)  ;;  %v264_v5 = vld [vmem:[%s883_s6 + $0x50] sm:$0xff] (%p54_p5)  ;;  %261 = vst [vmem:[%s888_s7 + $0x18] sm:$0xff] (%p54_p5), %v260_v3 }
  0x19   : > { %263 = vst [vmem:[%s888_s7 + $0x20] sm:$0xff] (%p54_p5), %v262_v4  ;;  %265 = vst [vmem:[%s888_s7 + $0x28] sm:$0xff] (%p54_p5), %v264_v5  ;;  %v266_v6 = vld [vmem:[%s883_s6 + $0x60] sm:$0xff] (%p54_p5)  ;;  %v268_v7 = vld [vmem:[%s883_s6 + $0x70] sm:$0xff] (%p54_p5) }
  0x1a   : > { %v270_v8 = vld [vmem:[%s883_s6 + $0x80] sm:$0xff]  ;;  %267 = vst [vmem:[%s888_s7 + $0x30] sm:$0xff] %v266_v6  ;;  %269 = vst [vmem:[%s888_s7 + $0x38] sm:$0xff] %v268_v7  ;;  %v272_v9 = vld [vmem:[%s883_s6 + $0x90] sm:$0xff] }
  0x1b   : > { %271 = vst [vmem:[%s888_s7 + $0x40] sm:$0xff] %v270_v8  ;;  %v274_v10 = vld [vmem:[%s883_s6 + $0xa0] sm:$0xff]  ;;  %v276_v11 = vld [vmem:[%s883_s6 + $0xb0] sm:$0xff]  ;;  %273 = vst [vmem:[%s888_s7 + $0x48] sm:$0xff] %v272_v9 }
  0x1c   : > { %275 = vst [vmem:[%s888_s7 + $0x50] sm:$0xff] %v274_v10  ;;  %277 = vst [vmem:[%s888_s7 + $0x58] sm:$0xff] %v276_v11  ;;  %v278_v12 = vld [vmem:[%s883_s6 + $0xc0] sm:$0xff]  ;;  %v280_v13 = vld [vmem:[%s883_s6 + $0xd0] sm:$0xff] }
  0x1d   : > { %v282_v14 = vld [vmem:[%s883_s6 + $0xe0] sm:$0xff]  ;;  %279 = vst [vmem:[%s888_s7 + $0x60] sm:$0xff] %v278_v12  ;;  %281 = vst [vmem:[%s888_s7 + $0x68] sm:$0xff] %v280_v13  ;;  %v284_v15 = vld [vmem:[%s883_s6 + $0xf0] sm:$0xff] }
  0x1e   : > { %283 = vst [vmem:[%s888_s7 + $0x70] sm:$0xff] %v282_v14  ;;  %v286_v16 = vld [vmem:[%s883_s6 + $0x100] sm:$0xff]  ;;  %v288_v17 = vld [vmem:[%s883_s6 + $0x110] sm:$0xff]  ;;  %285 = vst [vmem:[%s888_s7 + $0x78] sm:$0xff] %v284_v15 }
  0x1f   : > { %287 = vst [vmem:[%s888_s7 + $0x80] sm:$0xff] %v286_v16  ;;  %289 = vst [vmem:[%s888_s7 + $0x88] sm:$0xff] %v288_v17  ;;  %v290_v18 = vld [vmem:[%s883_s6 + $0x120] sm:$0xff]  ;;  %v292_v19 = vld [vmem:[%s883_s6 + $0x130] sm:$0xff] }
  0x20   : > { %v294_v20 = vld [vmem:[%s883_s6 + $0x140] sm:$0xff]  ;;  %291 = vst [vmem:[%s888_s7 + $0x90] sm:$0xff] %v290_v18  ;;  %293 = vst [vmem:[%s888_s7 + $0x98] sm:$0xff] %v292_v19  ;;  %v296_v21 = vld [vmem:[%s883_s6 + $0x150] sm:$0xff] }
  0x21   : > { %295 = vst [vmem:[%s888_s7 + $0xa0] sm:$0xff] %v294_v20  ;;  %v298_v22 = vld [vmem:[%s883_s6 + $0x160] sm:$0xff]  ;;  %v300_v23 = vld [vmem:[%s883_s6 + $0x170] sm:$0xff]  ;;  %297 = vst [vmem:[%s888_s7 + $0xa8] sm:$0xff] %v296_v21 }
  0x22   : > { %299 = vst [vmem:[%s888_s7 + $0xb0] sm:$0xff] %v298_v22  ;;  %301 = vst [vmem:[%s888_s7 + $0xb8] sm:$0xff] %v300_v23  ;;  %v302_v24 = vld [vmem:[%s883_s6 + $0x180] sm:$0xff]  ;;  %v304_v25 = vld [vmem:[%s883_s6 + $0x190] sm:$0xff] }
  0x23   : > { %v306_v26 = vld [vmem:[%s883_s6 + $0x1a0] sm:$0xff]  ;;  %303 = vst [vmem:[%s888_s7 + $0xc0] sm:$0xff] %v302_v24  ;;  %305 = vst [vmem:[%s888_s7 + $0xc8] sm:$0xff] %v304_v25  ;;  %v308_v27 = vld [vmem:[%s883_s6 + $0x1b0] sm:$0xff] }
  0x24   : > { %307 = vst [vmem:[%s888_s7 + $0xd0] sm:$0xff] %v306_v26  ;;  %v310_v28 = vld [vmem:[%s883_s6 + $0x1c0] sm:$0xff]  ;;  %v312_v29 = vld [vmem:[%s883_s6 + $0x1d0] sm:$0xff]  ;;  %309 = vst [vmem:[%s888_s7 + $0xd8] sm:$0xff] %v308_v27 }
  0x25   : > { %311 = vst [vmem:[%s888_s7 + $0xe0] sm:$0xff] %v310_v28  ;;  %313 = vst [vmem:[%s888_s7 + $0xe8] sm:$0xff] %v312_v29  ;;  %v314_v30 = vld [vmem:[%s883_s6 + $0x1e0] sm:$0xff]  ;;  %v316_v31 = vld [vmem:[%s883_s6 + $0x1f0] sm:$0xff] }
  0x26   : > { %315 = vst [vmem:[%s888_s7 + $0xf0] sm:$0xff] %v314_v30  ;;  %317 = vst [vmem:[%s888_s7 + $0xf8] sm:$0xff] %v316_v31 }
  0x27 PF: > { %p614_p10 = scmp.ge.s32.totalorder %s800_s18, 1  ;;  %p322_p11 = scmp.lt.s32.totalorder %s800_s18, 3 }
  0x29   : > { %p323_p12 = pnand %p614_p10, %p322_p11 }
  0x2a   : > { %s954_s8 = sand.u32 (!%p323_p12), 1, %s792_s16   ;;  %v959_v32 = vld.sshfl [vmem:[%s1058_s0] sm:$0x33 pattern:$0x76325410] (!%p323_p12)  ;;  %vm469_vm0 = vcmask (!%p323_p12), 1041408  }
  0x2b   : > { %326 = sbr.rel (%p323_p12) target bundleno = 379 (0x17b), region = 70  ;;  %s615_s11 = sshll.u32 (!%p323_p12), %s954_s8, 8  ;;  %v396_v33 = vcombine.high (!%p323_p12), %v959_v32, %v959_v32 }
  0x2c   : > { %s964_s12 = scalar_lea.vmem (!%p323_p12), [#allocation2], %s615_s11  ;;  %s617_s13 = sshll.u32 (!%p323_p12), %s849_s19, 7 }
  0x2d   : > { %v372_v34 = vld [vmem:[%s964_s12 + $0x80] sm:$0xff] (!%p323_p12)  ;;  %v373_v35 = vld [vmem:[%s964_s12 + $0x88] sm:$0xff] (!%p323_p12)  ;;  %463 = vmatprep.mubr.f32.mxu0 (!%p323_p12), %v396_v33  ;;  %v374_v39 = vld [vmem:[%s964_s12 + $0x90] sm:$0xff] (!%p323_p12)  ;;  %s491_s14 = sshra.s32 (!%p323_p12), %s617_s13, 7  ;;  %s616_s30 = sshll.u32 (!%p323_p12), %s954_s8, 1 }
  0x2e   : > { %v356_v36 = vld [vmem:[%s964_s12] sm:$0xff] (!%p323_p12)  ;;  %v661_v37 = vpack.c.bf16 (!%p323_p12), %v373_v35, %v372_v34  ;;  %v357_v38 = vld [vmem:[%s964_s12 + $0x8] sm:$0xff] (!%p323_p12)  ;;  %v375_v40 = vld [vmem:[%s964_s12 + $0x98] sm:$0xff] (!%p323_p12)  ;;  %s493_s23 = scalar_lea.vmem (!%p323_p12), %s1060_s2, %s491_s14  ;;  %s506_s29 = scalar_lea.vmem (!%p323_p12), %s1061_s3, %s491_s14 }
  0x2f   : > { %v663_v41 = vpack.c.bf16 (!%p323_p12), %v357_v38, %v356_v36  ;;  %v665_v42 = vpack.c.bf16 (!%p323_p12), %v375_v40, %v374_v39  ;;  %v358_v43 = vld [vmem:[%s964_s12 + $0x10] sm:$0xff] (!%p323_p12)  ;;  %v359_v44 = vld [vmem:[%s964_s12 + $0x18] sm:$0xff] (!%p323_p12)  ;;  %v376_v45 = vld [vmem:[%s964_s12 + $0xa0] sm:$0xff] (!%p323_p12)  ;;  %s621_s5 = sshll.u32 (!%p323_p12), %s491_s14, 1  ;;  %s623_s10 = sshll.u32 (!%p323_p12), %s849_s19, 5 }
  0x30   : > { %662 = vmatprep.subr.bf16.mxu0 (!%p323_p12), %v661_v37  ;;  %v377_v46 = vld [vmem:[%s964_s12 + $0xa8] sm:$0xff] (!%p323_p12)  ;;  %v667_v47 = vpack.c.bf16 (!%p323_p12), %v359_v44, %v358_v43  ;;  %v360_v49 = vld [vmem:[%s964_s12 + $0x20] sm:$0xff] (!%p323_p12)  ;;  %v378_v51 = vld [vmem:[%s964_s12 + $0xb0] sm:$0xff] (!%p323_p12)  ;;  %s522_s9 = scalar_lea.vmem (!%p323_p12), %s1058_s0, %s621_s5  ;;  %s353_s11 = scalar_lea.vmem (!%p323_p12), [#allocation3], %s616_s30 }
  0x31   : > { %664 = vmatpush3.bf16.msra.mxu0 (!%p323_p12), %v663_v41  ;;  %v669_v48 = vpack.c.bf16 (!%p323_p12), %v377_v46, %v376_v45  ;;  %v361_v50 = vld [vmem:[%s964_s12 + $0x28] sm:$0xff] (!%p323_p12)  ;;  %v379_v52 = vld [vmem:[%s964_s12 + $0xb8] sm:$0xff] (!%p323_p12)  ;;  %v362_v55 = vld [vmem:[%s964_s12 + $0x30] sm:$0xff] (!%p323_p12)  ;;  %s1014_s22 = scalar_lea.hbm (!%p323_p12), %s1062_s4, %s623_s10  ;;  %s527_s14 = scalar_lea.sflag (!%p323_p12), [#allocation4], %s954_s8 }
  0x32   : > { %666 = vmatprep.subr.bf16.mxu0 %v665_v42  ;;  %v671_v53 = vpack.c.bf16 %v361_v50, %v360_v49  ;;  %v673_v54 = vpack.c.bf16 %v379_v52, %v378_v51  ;;  %v363_v56 = vld [vmem:[%s964_s12 + $0x38] sm:$0xff]  ;;  %v380_v57 = vld [vmem:[%s964_s12 + $0xc0] sm:$0xff]  ;;  %v381_v58 = vld [vmem:[%s964_s12 + $0xc8] sm:$0xff]  ;;  %v500_v42 = vlaneseq  ;;  %s802_s19 = smov [#allocation3]  }
  0x33   : > { %v675_v59 = vpack.c.bf16 %v363_v56, %v362_v55  ;;  %v677_v60 = vpack.c.bf16 %v381_v58, %v380_v57  ;;  %v364_v61 = vld [vmem:[%s964_s12 + $0x40] sm:$0xff]  ;;  %v365_v62 = vld [vmem:[%s964_s12 + $0x48] sm:$0xff]  ;;  %v382_v63 = vld [vmem:[%s964_s12 + $0xd0] sm:$0xff]  ;;  %s742_s27 = sshll.u32 %s802_s19, 4  ;;  %s743_s27 = int_to_ptr.vmem [resolvable:$false] %s742_s27 }
  0x34   : > { %v383_v0 = vld [vmem:[%s964_s12 + $0xd8] sm:$0xff]  ;;  %v679_v1 = vpack.c.bf16 %v365_v62, %v364_v61  ;;  %v366_v3 = vld [vmem:[%s964_s12 + $0x50] sm:$0xff]  ;;  %v384_v5 = vld [vmem:[%s964_s12 + $0xe0] sm:$0xff]  ;;  %v501_v43 = vshrl.u32 %v500_v42, 7  ;;  %s744_s28 = scalar_lea.vmem %s743_s27, 64 }
  0x35   : > { %668 = vmatpush3.bf16.msra.mxu0 %v667_v47  ;;  %v681_v2 = vpack.c.bf16 %v383_v0, %v382_v63  ;;  %v367_v4 = vld [vmem:[%s964_s12 + $0x58] sm:$0xff]  ;;  %v385_v6 = vld [vmem:[%s964_s12 + $0xe8] sm:$0xff]  ;;  %v368_v9 = vld [vmem:[%s964_s12 + $0x60] sm:$0xff] }
  0x36   : > { %670 = vmatprep.subr.bf16.mxu0 %v669_v48  ;;  %v683_v7 = vpack.c.bf16 %v367_v4, %v366_v3  ;;  %v685_v8 = vpack.c.bf16 %v385_v6, %v384_v5  ;;  %v369_v10 = vld [vmem:[%s964_s12 + $0x68] sm:$0xff]  ;;  %v386_v11 = vld [vmem:[%s964_s12 + $0xf0] sm:$0xff]  ;;  %v387_v12 = vld [vmem:[%s964_s12 + $0xf8] sm:$0xff]  ;;  %v502_v45 = vsub.s32 0, %v501_v43 }
  0x37   : > { %v687_v13 = vpack.c.bf16 %v369_v10, %v368_v9  ;;  %v689_v14 = vpack.c.bf16 %v387_v12, %v386_v11  ;;  %v370_v15 = vld [vmem:[%s964_s12 + $0x70] sm:$0xff]  ;;  %v371_v16 = vld [vmem:[%s964_s12 + $0x78] sm:$0xff]  ;;  %v494_v44 = vld [vmem:[%s493_s23] sm:$0x1]  ;;  %s540_s12 = sshll.u32 %s353_s11, 4  ;;  %s1016_s12 = int_to_ptr.vmem [resolvable:$true] %s540_s12 }
  0x38   : > { %v691_v17 = vpack.c.bf16 %v371_v16, %v370_v15  ;;  %v619_v50 = vld [vmem:[%s506_s29] ss:$0 sm:$0xff]  ;;  %s738_s23 = scalar_lea.vmem %s1016_s12, 32  ;;  %p745_p2 = scmp.lt.s32.totalorder %s1016_s12, %s743_s27 }
  0x39   : > { %672 = vmatpush3.bf16.msra.mxu0 %v671_v53  ;;  %v523_v56 = vld [vmem:[%s522_s9] sm:$0x3]  ;;  %p739_p13 = scmp.ne.s32.totalorder %s1016_s12, %s738_s23  ;;  %p746_p3 = scmp.lt.s32.totalorder %s744_s28, %s738_s23 }
  0x3a   : > { %674 = vmatprep.subr.bf16.mxu0 %v673_v54 }
  0x3b   : > { %p740_p0 = pnand %p739_p13, %p867_p6  ;;  %p747_p4 = por %p746_p3, %p745_p2 }
  0x3d   : > { %676 = vmatpush3.bf16.msra.mxu0 %v675_v59  ;;  %p741_p1 = pneg %p740_p0 }
  0x3e   : > { %678 = vmatprep.subr.bf16.mxu0 %v677_v60 }
  0x3f   : > { %p748_p5 = pnand %p747_p4, %p741_p1 }
  0x41   : > { %680 = vmatpush3.bf16.msra.mxu0 %v679_v1 }
  0x42   : > { %682 = vmatprep.subr.bf16.mxu0 %v681_v2 }
  0x45   : > { %684 = vmatpush3.bf16.msra.mxu0 %v683_v7 }
  0x46   : > { %686 = vmatprep.subr.bf16.mxu0 %v685_v8 }
  0x49   : > { %688 = vmatpush3.bf16.msra.mxu0 %v687_v13 }
  0x4a   : > { %690 = vmatprep.subr.bf16.mxu0 %v689_v14 }
  0x4d   : > { %692 = vmatpush3.bf16.msra.mxu0 %v691_v17 }
  0x50   : > { %464 = vmatmul.mubr.f32.vlgmr.msra.gmra.mrb[0].mxu0 %v959_v32 }
 0x123   : > { %v658_v18 = vpop.f32.mrb[0].mxu0 }
 0x124   : > { %v659_v19 = vpop.f32.mrb[1].mxu0 }
 0x125   : > { %v660_v20 = vadd.f32 %v659_v19, %v658_v18 }
 0x127   : > { %v470_v21 = vsel %vm469_vm0, %v660_v20, 0.0  ;;  %v479_v22 = vmul.f32 %v660_v20, %v660_v20 }
 0x128   : > { %v471_v23 = vrot.slane %v470_v21, 4 }
 0x129   : > { %v480_v24 = vsel %vm469_vm0, %v479_v22, 0.0 }
 0x12a   : > { %v472_v25 = vadd.f32 %v471_v23, %v470_v21  ;;  %v481_v26 = vrot.slane %v480_v24, 4 }
 0x12c   : > { %v473_v27 = vrot.slane %v472_v25, 2  ;;  %v482_v28 = vadd.f32 %v481_v26, %v480_v24 }
 0x12e   : > { %v474_v29 = vadd.f32 %v473_v27, %v472_v25  ;;  %v483_v30 = vrot.slane %v482_v28, 2 }
 0x130   : > { %v475_v31 = vrot.slane %v474_v29, 1  ;;  %v484_v33 = vadd.f32 %v483_v30, %v482_v28 }
 0x132   : > { %v476_v34 = vadd.f32 %v475_v31, %v474_v29  ;;  %v485_v35 = vrot.slane %v484_v33, 1 }
 0x134   : > { %v478_v32 = vmul.f32 0.5, %v476_v34  ;;  %v486_v36 = vadd.f32 %v485_v35, %v484_v33 }
 0x136   : > { %v487_v37 = vmul.f32 0.5, %v486_v36  ;;  %v488_v38 = vmul.f32 %v478_v32, %v478_v32  ;;  %v498_v48 = vsub.f32 %v660_v20, %v478_v32 }
 0x138   : > { %v489_v39 = vsub.f32 %v487_v37, %v488_v38 }
 0x13a   : > { %v490_v40 = vmax.f32 %v489_v39, 0.0 }
 0x13c   : > { %v495_v41 = vadd.f32 1e-05, %v490_v40 }
 0x13e   : > { %732 = vrsqrt.f32 %v495_v41 }
 0x148   : > { %v733_v46 = vpop.eup %732 }
 0x149   : > { %v497_v47 = vmul.f32 %v733_v46, %v494_v44 }
 0x14b   : > { %v503_v49 = vrot.slane %v497_v47, %v502_v45 }
 0x14d   : > { %v505_v51 = vmul.f32 %v503_v49, %v498_v48 }
 0x14f   : > { %v514_v52 = vadd.f32 %v619_v50, %v505_v51 }
 0x151   : > { %v620_v53 = vmul.f32 -1.442695, %v514_v52 }
 0x153   : > { %734 = vpow2.f32 %v620_v53 }
 0x15d   : > { %v735_v54 = vpop.eup %734 }
 0x15e   : > { %v518_v55 = vadd.f32 1.0, %v735_v54 }
 0x160   : > { %736 = vrcp.f32 %v518_v55 }
 0x16a   : > { %v737_v57 = vpop.eup %736 }
 0x16b   : > { %v524_v58 = vmul.f32 %v737_v57, %v523_v56 }
 0x16d   : > { %525 = vst [vmem:[%s353_s11] sm:$0x3] %v524_v58 }
 0x16e   : > { %751 = shalt.err (!%p748_p5)
}
 0x16f   : > { %s752_s8 = scalar_lea.hbm %s1014_s22, 32  ;;  %s756_s5 = scalar_lea.hbm %s1062_s4, 64 }
 0x170   : > { %p753_p7 = scmp.ne.s32.totalorder %s1014_s22, %s752_s8  ;;  %p757_p12 = scmp.lt.u32.totalorder %s1014_s22, %s1062_s4 }
 0x171   : > { %p758_p13 = scmp.lt.u32.totalorder %s756_s5, %s752_s8  ;;  %p760_p1 = scmp.lt.u32.totalorder %s752_s8, %s1014_s22 }
 0x172   : > { %p754_p10 = pnand %p753_p7, %p867_p6 }
 0x173   : > { %p759_p0 = por %p758_p13, %p757_p12 }
 0x174   : > { %p755_p11 = pneg %p754_p10 }
 0x175   : > { %p761_p2 = por %p760_p1, %p759_p0 }
 0x177   : > { %p762_p3 = pnand %p761_p2, %p755_p11 }
 0x179   : > { %765 = shalt.err (!%p762_p3)
}
 0x17a   : > { %693 = dma.vmem_to_hbm [thread:$0]  (%p867_p6), %s1016_s12, 32, %s1014_s22, %s527_s14  }
 0x17b PF: > { %s552_s9 = sand.u32 1, %s788_s15   ;;  %p696_p4 = pnand %p611_p9, %p871_p8 }
 0x17c   : > { %s553_s10 = scalar_lea.sflag [#allocation4], %s552_s9 }
 0x17d   : > { %783 = dma.done.wait (!%p696_p4), %s553_s10, 32  }
 0x17e   : > { %785 = vsyncadd (!%p696_p4), %s553_s10, 4294967264  ;;  %p14_p5 = scmp.ge.s32.totalorder %s853_s21, 4   ;;  %s1065_s15 = smov %s792_s16 }
 0x17f   : > { %s1066_s16 = smov %s796_s17  ;;  %s1067_s17 = smov %s865_s24 }
 0x180   : > { %s1068_s18 = smov %s853_s21  ;;  %16 = sbr.rel (!%p14_p5) target bundleno = 3 (0x3), region = 117 }
 0x187   :  { %558 = vsyncpa [#allocation4], 1 }
 0x188   :  { %560 = vsyncpa [#allocation4 + $0x1], 1 }

</bundles_post_ra>
